<compile_context>
chip_gen: v5e
topology: v5e:2x2
jax: 0.10.0
libtpu: 0.0.40
codegen_flags: <defaults>
</compile_context>

<pallas_src>
import functools

import jax
import jax.numpy as jnp
from jax import lax
from jax.experimental import pallas as pl
from jax.experimental.pallas import tpu as pltpu

EPS = 1e-5


# ----------------------------- in-kernel helpers -----------------------------
def _bn_relu(a2, gamma, beta, fold, bcast, inv_count):
    """Train-mode BatchNorm + ReLU on a lane-dense (rows, W*C) slab.

    Per-channel batch stats via one-pass sum / sum-of-squares:
      - sublane sum over rows -> (1, W*C)
      - tiny MXU matmul with `fold` (W*C, C) -> per-channel (1, C)
      - scale/bias computed per channel, re-broadcast to (1, W*C) with `bcast`.
    """
    s = jnp.sum(a2, axis=0, keepdims=True)                               # (1, W*C)
    q = jnp.sum(a2 * a2, axis=0, keepdims=True)                          # (1, W*C)
    mean = jnp.dot(s, fold, preferred_element_type=jnp.float32) * inv_count   # (1, C)
    ex2 = jnp.dot(q, fold, preferred_element_type=jnp.float32) * inv_count    # (1, C)
    var = ex2 - mean * mean                                              # biased var
    scale = gamma * lax.rsqrt(var + EPS)                                 # (1, C)
    bias = beta - mean * scale                                           # (1, C)
    scale_row = jnp.dot(scale, bcast, preferred_element_type=jnp.float32)  # (1, W*C)
    bias_row = jnp.dot(bias, bcast, preferred_element_type=jnp.float32)    # (1, W*C)
    return jnp.maximum(a2 * scale_row + bias_row, 0.0)


def _bottleneck_kernel(x_ref, w1_ref, w2_ref, w3_ref,
                       g1_ref, b1_ref, g2_ref, b2_ref, g3_ref, b3_ref,
                       fin_ref, bcin_ref, fp_ref, bcp_ref,
                       o_ref, *, h_img, w_img):
    NH = x_ref.shape[0]                       # N * H rows
    inv_cnt = 1.0 / float(NH * w_img)         # 1 / (N*H*W)

    # ---- BN1 (batch stats) + ReLU, lane-dense (NH, W*Cin) -------------------
    h1 = _bn_relu(x_ref[...], g1_ref[...], b1_ref[...],
                  fin_ref[...], bcin_ref[...], inv_cnt)

    # ---- conv_1 (1x1): ONE lane-dense bf16 matmul on the MXU ----------------
    y1 = jnp.dot(h1.astype(jnp.bfloat16), w1_ref[...],
                 preferred_element_type=jnp.float32)              # (NH, W*P)

    # ---- BN2 + ReLU ----------------------------------------------------------
    h2 = _bn_relu(y1, g2_ref[...], b2_ref[...], fp_ref[...], bcp_ref[...], inv_cnt)

    # ---- conv_2 (3x3, stride 1, pad 1): THREE lane-dense bf16 matmuls -------
    # kw offsets + W-boundary padding live inside the banded weights; only the
    # H (row) shifts are done here, with per-image boundary masking.
    h2b = h2.astype(jnp.bfloat16)
    wp = h2b.shape[1]
    zrow = jnp.zeros((1, wp), jnp.bfloat16)
    hh = lax.broadcasted_iota(jnp.int32, (NH, 1), 0) % h_img       # h index per row

    sh_m1 = jnp.concatenate([zrow, h2b[:-1, :]], axis=0)           # reads (n, h-1)
    sh_m1 = jnp.where(hh >= 1, sh_m1, jnp.zeros_like(sh_m1))
    sh_p1 = jnp.concatenate([h2b[1:, :], zrow], axis=0)            # reads (n, h+1)
    sh_p1 = jnp.where(hh < h_img - 1, sh_p1, jnp.zeros_like(sh_p1))

    y2 = jnp.dot(sh_m1, w2_ref[0], preferred_element_type=jnp.float32)
    y2 = y2 + jnp.dot(h2b, w2_ref[1], preferred_element_type=jnp.float32)
    y2 = y2 + jnp.dot(sh_p1, w2_ref[2], preferred_element_type=jnp.float32)

    # ---- BN3 + ReLU ----------------------------------------------------------
    h3 = _bn_relu(y2, g3_ref[...], b3_ref[...], fp_ref[...], bcp_ref[...], inv_cnt)

    # ---- conv_3 (1x1): ONE lane-dense bf16 matmul ----------------------------
    y3 = jnp.dot(h3.astype(jnp.bfloat16), w3_ref[...],
                 preferred_element_type=jnp.float32)              # (NH, W*Cout)

    # ---- identity residual (downsample=None); lane-dense (512-wide) store ----
    o_ref[...] = y3 + x_ref[...]


# ------------------------------ host-side setup -------------------------------
def _prepare_weights(w1, w2, w3, wdim):
    """Expand weights / stat helpers into the lane-dense (W folded into lanes)
    kernel layout.  w1: (Cin, P)  w2: (3, 3, P, P) HWIO  w3: (P, 4*P)."""
    cin, p = w1.shape
    eye_w = jnp.eye(wdim, dtype=jnp.float32)
    w1big = jnp.kron(eye_w, w1).astype(jnp.bfloat16)               # (W*Cin, W*P)
    w3big = jnp.kron(eye_w, w3).astype(jnp.bfloat16)               # (W*P, W*Cout)
    mats = []
    for kh in range(3):                                            # dh = kh - 1
        m = jnp.zeros((wdim * p, wdim * p), jnp.float32)
        for kw, dw in enumerate((-1, 0, 1)):
            # band matrix: input col w' feeds output col w iff w' - w == dw
            m = m + jnp.kron(jnp.eye(wdim, k=-dw, dtype=jnp.float32), w2[kh, kw])
        mats.append(m)
    w2big = jnp.stack(mats).astype(jnp.bfloat16)                   # (3, W*P, W*P)
    # fold: (W*C, C) sums the W copies of each channel; bcast: (C, W*C) re-tiles.
    fold_in = jnp.kron(jnp.ones((wdim, 1), jnp.float32), jnp.eye(cin, dtype=jnp.float32))
    bcast_in = jnp.kron(jnp.ones((1, wdim), jnp.float32), jnp.eye(cin, dtype=jnp.float32))
    fold_p = jnp.kron(jnp.ones((wdim, 1), jnp.float32), jnp.eye(p, dtype=jnp.float32))
    bcast_p = jnp.kron(jnp.ones((1, wdim), jnp.float32), jnp.eye(p, dtype=jnp.float32))
    return w1big, w2big, w3big, fold_in, bcast_in, fold_p, bcast_p


@functools.partial(jax.jit, static_argnames=("h_img", "w_img"))
def _bottleneck_lane_dense(x2, w1big, w2big, w3big,
                           g1, b1, g2, b2, g3, b3,
                           fin, bcin, fp, bcp, *, h_img, w_img):
    nh = x2.shape[0]
    out_cols = w3big.shape[1]                  # W * Cout (multiple of 128 -> lane-dense)
    kern = functools.partial(_bottleneck_kernel, h_img=h_img, w_img=w_img)
    return pl.pallas_call(
        kern,
        out_shape=jax.ShapeDtypeStruct((nh, out_cols), jnp.float32),
        in_specs=[pl.BlockSpec(memory_space=pltpu.MemorySpace.VMEM)] * 14,
        out_specs=pl.BlockSpec(memory_space=pltpu.MemorySpace.VMEM),
    )(x2, w1big, w2big, w3big, g1, b1, g2, b2, g3, b3, fin, bcin, fp, bcp)


def bottleneck_forward_nhwc(x_nhwc, params):
    """PreResNet Bottleneck forward (train-mode BN), stride=1, downsample=None.

    NHWC in / NHWC out (lane-friendly boundary, no wrapper transposes)."""
    n, h, w, cin = x_nhwc.shape
    p = params["w1"].shape[1]
    cout = params["w3"].shape[1]
    assert cout == 4 * p and cin == cout, \
        "identity residual requires inplanes == planes * expansion (4)"
    w1big, w2big, w3big, fin, bcin, fp, bcp = _prepare_weights(
        params["w1"], params["w2"], params["w3"], w)
    x2 = x_nhwc.reshape(n * h, w * cin)        # free reshape of contiguous NHWC
    out2 = _bottleneck_lane_dense(
        x2, w1big, w2big, w3big,
        params["g1"], params["b1"], params["g2"], params["b2"],
        params["g3"], params["b3"], fin, bcin, fp, bcp,
        h_img=h, w_img=w)
    return out2.reshape(n, h, w, cout)


def bottleneck_forward_nchw(x_nchw, params):
    """PyTorch-facing NCHW wrapper (prefer the NHWC entry point on TPU)."""
    out = bottleneck_forward_nhwc(jnp.transpose(x_nchw, (0, 2, 3, 1)), params)
    return jnp.transpose(out, (0, 3, 1, 2))


# ---------------------------- pure-JAX reference ------------------------------
def _bn_train(x, g, b):
    mu = jnp.mean(x, axis=(0, 1, 2), keepdims=True)
    var = jnp.mean((x - mu) ** 2, axis=(0, 1, 2), keepdims=True)
    return (x - mu) * lax.rsqrt(var + EPS) * g.reshape(1, 1, 1, -1) + b.reshape(1, 1, 1, -1)


def reference_nhwc(x, params):
    h = jax.nn.relu(_bn_train(x, params["g1"], params["b1"]))
    h = jnp.einsum("nhwc,cp->nhwp", h, params["w1"])                       # conv 1x1
    h = jax.nn.relu(_bn_train(h, params["g2"], params["b2"]))
    h = lax.conv_general_dilated(h, params["w2"], (1, 1), "SAME",          # conv 3x3
                                 dimension_numbers=("NHWC", "HWIO", "NHWC"))
    h = jax.nn.relu(_bn_train(h, params["g3"], params["b3"]))
    h = jnp.einsum("nhwp,po->nhwo", h, params["w3"])                       # conv 1x1
    return h + x


if __name__ == "__main__":
    key = jax.random.PRNGKey(0)
    N, H, W = 2, 16, 16
    planes = 8
    Cin = Cout = 4 * planes          # 32: identity residual (stride=1, downsample=None)
    ks = jax.random.split(key, 10)

    x = jax.random.normal(ks[0], (N, H, W, Cin), jnp.float32)   # NHWC

    params = {
        # BN affine params (per channel)
        "g1": 1.0 + 0.1 * jax.random.normal(ks[1], (1, Cin), jnp.float32),
        "b1": 0.1 * jax.random.normal(ks[2], (1, Cin), jnp.float32),
        "g2": 1.0 + 0.1 * jax.random.normal(ks[3], (1, planes), jnp.float32),
        "b2": 0.1 * jax.random.normal(ks[4], (1, planes), jnp.float32),
        "g3": 1.0 + 0.1 * jax.random.normal(ks[5], (1, planes), jnp.float32),
        "b3": 0.1 * jax.random.normal(ks[6], (1, planes), jnp.float32),
        # conv weights (bias=False): 1x1 as (Cin, P), 3x3 as HWIO, 1x1 as (P, Cout)
        "w1": 0.1 * jax.random.normal(ks[7], (Cin, planes), jnp.float32),
        "w2": 0.1 * jax.random.normal(ks[8], (3, 3, planes, planes), jnp.float32),
        "w3": 0.1 * jax.random.normal(ks[9], (planes, Cout), jnp.float32),
    }

    out = bottleneck_forward_nhwc(x, params)
    out = jax.block_until_ready(out)

    ref = reference_nhwc(x, params)
    assert out.shape == (N, H, W, Cout)
    err = float(jnp.max(jnp.abs(out - ref)))
    # kernel feeds bf16 to the MXU (f32 accumulation) per perf guidance, so use
    # a bf16-appropriate tolerance against the f32 reference.
    assert jnp.allclose(out, ref, rtol=3e-2, atol=3e-2), f"max abs err {err}"

    print("KERNEL_OK")
</pallas_src>

<mosaic_0001>
module attributes {stable_mosaic.version = 11 : i64} {
  func.func @_bottleneck_kernel(%arg0: memref<32x512xf32, #tpu.memory_space<vmem>>, %arg1: memref<512x128xbf16, #tpu.memory_space<vmem>>, %arg2: memref<3x128x128xbf16, #tpu.memory_space<vmem>>, %arg3: memref<128x512xbf16, #tpu.memory_space<vmem>>, %arg4: memref<1x32xf32, #tpu.memory_space<vmem>>, %arg5: memref<1x32xf32, #tpu.memory_space<vmem>>, %arg6: memref<1x8xf32, #tpu.memory_space<vmem>>, %arg7: memref<1x8xf32, #tpu.memory_space<vmem>>, %arg8: memref<1x8xf32, #tpu.memory_space<vmem>>, %arg9: memref<1x8xf32, #tpu.memory_space<vmem>>, %arg10: memref<512x32xf32, #tpu.memory_space<vmem>>, %arg11: memref<32x512xf32, #tpu.memory_space<vmem>>, %arg12: memref<128x8xf32, #tpu.memory_space<vmem>>, %arg13: memref<8x128xf32, #tpu.memory_space<vmem>>, %arg14: memref<32x512xf32, #tpu.memory_space<vmem>>) attributes {dimension_semantics = [], scalar_prefetch = 0 : i64, scratch_operands = 0 : i64, tpu.core_type = #tpu.core_type<tc>} {
    %c0 = arith.constant 0 : index
    %c0_0 = arith.constant 0 : index
    %0 = vector.load %arg0[%c0, %c0_0] : memref<32x512xf32, #tpu.memory_space<vmem>>, vector<32x512xf32>
    %c0_1 = arith.constant 0 : index
    %c0_2 = arith.constant 0 : index
    %1 = vector.load %arg4[%c0_1, %c0_2] : memref<1x32xf32, #tpu.memory_space<vmem>>, vector<1x32xf32>
    %c0_3 = arith.constant 0 : index
    %c0_4 = arith.constant 0 : index
    %2 = vector.load %arg5[%c0_3, %c0_4] : memref<1x32xf32, #tpu.memory_space<vmem>>, vector<1x32xf32>
    %c0_5 = arith.constant 0 : index
    %c0_6 = arith.constant 0 : index
    %3 = vector.load %arg10[%c0_5, %c0_6] : memref<512x32xf32, #tpu.memory_space<vmem>>, vector<512x32xf32>
    %c0_7 = arith.constant 0 : index
    %c0_8 = arith.constant 0 : index
    %4 = vector.load %arg11[%c0_7, %c0_8] : memref<32x512xf32, #tpu.memory_space<vmem>>, vector<32x512xf32>
    %cst = arith.constant dense<0.000000e+00> : vector<512xf32>
    %5 = vector.multi_reduction <add>, %0, %cst [0] : vector<32x512xf32> to vector<512xf32>
    %6 = vector.shape_cast %5 : vector<512xf32> to vector<1x512xf32>
    %7 = arith.mulf %0, %0 : vector<32x512xf32>
    %cst_9 = arith.constant dense<0.000000e+00> : vector<512xf32>
    %8 = vector.multi_reduction <add>, %7, %cst_9 [0] : vector<32x512xf32> to vector<512xf32>
    %9 = vector.shape_cast %8 : vector<512xf32> to vector<1x512xf32>
    %cst_10 = arith.constant dense<0.000000e+00> : vector<1x32xf32>
    %10 = tpu.matmul %6, %3, %cst_10 {dimension_numbers = #tpu.dot_dimension_numbers<[1], [0], [0], [1], [0, 0, 1, 1], [], []>} : vector<1x512xf32>, vector<512x32xf32>, vector<1x32xf32> -> vector<1x32xf32>
    %cst_11 = arith.constant 0.001953125 : f32
    %11 = vector.broadcast %cst_11 : f32 to vector<1x32xf32>
    %12 = arith.mulf %10, %11 : vector<1x32xf32>
    %cst_12 = arith.constant dense<0.000000e+00> : vector<1x32xf32>
    %13 = tpu.matmul %9, %3, %cst_12 {dimension_numbers = #tpu.dot_dimension_numbers<[1], [0], [0], [1], [0, 0, 1, 1], [], []>} : vector<1x512xf32>, vector<512x32xf32>, vector<1x32xf32> -> vector<1x32xf32>
    %cst_13 = arith.constant 0.001953125 : f32
    %14 = vector.broadcast %cst_13 : f32 to vector<1x32xf32>
    %15 = arith.mulf %13, %14 : vector<1x32xf32>
    %16 = arith.mulf %12, %12 : vector<1x32xf32>
    %17 = arith.subf %15, %16 : vector<1x32xf32>
    %cst_14 = arith.constant 9.99999974E-6 : f32
    %18 = vector.broadcast %cst_14 : f32 to vector<1x32xf32>
    %19 = arith.addf %17, %18 : vector<1x32xf32>
    %20 = math.rsqrt %19 : vector<1x32xf32>
    %21 = arith.mulf %1, %20 : vector<1x32xf32>
    %22 = arith.mulf %12, %21 : vector<1x32xf32>
    %23 = arith.subf %2, %22 : vector<1x32xf32>
    %cst_15 = arith.constant dense<0.000000e+00> : vector<1x512xf32>
    %24 = tpu.matmul %21, %4, %cst_15 {dimension_numbers = #tpu.dot_dimension_numbers<[1], [0], [0], [1], [0, 0, 1, 1], [], []>} : vector<1x32xf32>, vector<32x512xf32>, vector<1x512xf32> -> vector<1x512xf32>
    %cst_16 = arith.constant dense<0.000000e+00> : vector<1x512xf32>
    %25 = tpu.matmul %23, %4, %cst_16 {dimension_numbers = #tpu.dot_dimension_numbers<[1], [0], [0], [1], [0, 0, 1, 1], [], []>} : vector<1x32xf32>, vector<32x512xf32>, vector<1x512xf32> -> vector<1x512xf32>
    %26 = vector.broadcast %24 : vector<1x512xf32> to vector<32x512xf32>
    %27 = arith.mulf %0, %26 : vector<32x512xf32>
    %28 = vector.broadcast %25 : vector<1x512xf32> to vector<32x512xf32>
    %29 = arith.addf %27, %28 : vector<32x512xf32>
    %cst_17 = arith.constant 0.000000e+00 : f32
    %30 = vector.broadcast %cst_17 : f32 to vector<32x512xf32>
    %31 = arith.maximumf %29, %30 : vector<32x512xf32>
    %32 = arith.truncf %31 : vector<32x512xf32> to vector<32x512xbf16>
    %c0_18 = arith.constant 0 : index
    %c0_19 = arith.constant 0 : index
    %33 = vector.load %arg1[%c0_18, %c0_19] : memref<512x128xbf16, #tpu.memory_space<vmem>>, vector<512x128xbf16>
    %cst_20 = arith.constant dense<0.000000e+00> : vector<32x128xf32>
    %34 = tpu.matmul %32, %33, %cst_20 {dimension_numbers = #tpu.dot_dimension_numbers<[1], [0], [0], [1], [0, 0, 1, 1], [], []>} : vector<32x512xbf16>, vector<512x128xbf16>, vector<32x128xf32> -> vector<32x128xf32>
    %c0_21 = arith.constant 0 : index
    %c0_22 = arith.constant 0 : index
    %35 = vector.load %arg6[%c0_21, %c0_22] : memref<1x8xf32, #tpu.memory_space<vmem>>, vector<1x8xf32>
    %c0_23 = arith.constant 0 : index
    %c0_24 = arith.constant 0 : index
    %36 = vector.load %arg7[%c0_23, %c0_24] : memref<1x8xf32, #tpu.memory_space<vmem>>, vector<1x8xf32>
    %c0_25 = arith.constant 0 : index
    %c0_26 = arith.constant 0 : index
    %37 = vector.load %arg12[%c0_25, %c0_26] : memref<128x8xf32, #tpu.memory_space<vmem>>, vector<128x8xf32>
    %c0_27 = arith.constant 0 : index
    %c0_28 = arith.constant 0 : index
    %38 = vector.load %arg13[%c0_27, %c0_28] : memref<8x128xf32, #tpu.memory_space<vmem>>, vector<8x128xf32>
    %cst_29 = arith.constant dense<0.000000e+00> : vector<128xf32>
    %39 = vector.multi_reduction <add>, %34, %cst_29 [0] : vector<32x128xf32> to vector<128xf32>
    %40 = vector.shape_cast %39 : vector<128xf32> to vector<1x128xf32>
    %41 = arith.mulf %34, %34 : vector<32x128xf32>
    %cst_30 = arith.constant dense<0.000000e+00> : vector<128xf32>
    %42 = vector.multi_reduction <add>, %41, %cst_30 [0] : vector<32x128xf32> to vector<128xf32>
    %43 = vector.shape_cast %42 : vector<128xf32> to vector<1x128xf32>
    %cst_31 = arith.constant dense<0.000000e+00> : vector<1x8xf32>
    %44 = tpu.matmul %40, %37, %cst_31 {dimension_numbers = #tpu.dot_dimension_numbers<[1], [0], [0], [1], [0, 0, 1, 1], [], []>} : vector<1x128xf32>, vector<128x8xf32>, vector<1x8xf32> -> vector<1x8xf32>
    %cst_32 = arith.constant 0.001953125 : f32
    %45 = vector.broadcast %cst_32 : f32 to vector<1x8xf32>
    %46 = arith.mulf %44, %45 : vector<1x8xf32>
    %cst_33 = arith.constant dense<0.000000e+00> : vector<1x8xf32>
    %47 = tpu.matmul %43, %37, %cst_33 {dimension_numbers = #tpu.dot_dimension_numbers<[1], [0], [0], [1], [0, 0, 1, 1], [], []>} : vector<1x128xf32>, vector<128x8xf32>, vector<1x8xf32> -> vector<1x8xf32>
    %cst_34 = arith.constant 0.001953125 : f32
    %48 = vector.broadcast %cst_34 : f32 to vector<1x8xf32>
    %49 = arith.mulf %47, %48 : vector<1x8xf32>
    %50 = arith.mulf %46, %46 : vector<1x8xf32>
    %51 = arith.subf %49, %50 : vector<1x8xf32>
    %cst_35 = arith.constant 9.99999974E-6 : f32
    %52 = vector.broadcast %cst_35 : f32 to vector<1x8xf32>
    %53 = arith.addf %51, %52 : vector<1x8xf32>
    %54 = math.rsqrt %53 : vector<1x8xf32>
    %55 = arith.mulf %35, %54 : vector<1x8xf32>
    %56 = arith.mulf %46, %55 : vector<1x8xf32>
    %57 = arith.subf %36, %56 : vector<1x8xf32>
    %cst_36 = arith.constant dense<0.000000e+00> : vector<1x128xf32>
    %58 = tpu.matmul %55, %38, %cst_36 {dimension_numbers = #tpu.dot_dimension_numbers<[1], [0], [0], [1], [0, 0, 1, 1], [], []>} : vector<1x8xf32>, vector<8x128xf32>, vector<1x128xf32> -> vector<1x128xf32>
    %cst_37 = arith.constant dense<0.000000e+00> : vector<1x128xf32>
    %59 = tpu.matmul %57, %38, %cst_37 {dimension_numbers = #tpu.dot_dimension_numbers<[1], [0], [0], [1], [0, 0, 1, 1], [], []>} : vector<1x8xf32>, vector<8x128xf32>, vector<1x128xf32> -> vector<1x128xf32>
    %60 = vector.broadcast %58 : vector<1x128xf32> to vector<32x128xf32>
    %61 = arith.mulf %34, %60 : vector<32x128xf32>
    %62 = vector.broadcast %59 : vector<1x128xf32> to vector<32x128xf32>
    %63 = arith.addf %61, %62 : vector<32x128xf32>
    %cst_38 = arith.constant 0.000000e+00 : f32
    %64 = vector.broadcast %cst_38 : f32 to vector<32x128xf32>
    %65 = arith.maximumf %63, %64 : vector<32x128xf32>
    %66 = arith.truncf %65 : vector<32x128xf32> to vector<32x128xbf16>
    %cst_39 = arith.constant 0.000000e+00 : bf16
    %67 = vector.broadcast %cst_39 : bf16 to vector<1x128xbf16>
    %68 = tpu.iota {dimensions = array<i32: 0>} : vector<32x1xi32>
    %c16_i32 = arith.constant 16 : i32
    %c0_i32 = arith.constant 0 : i32
    %69 = arith.cmpi eq, %c16_i32, %c0_i32 : i32
    %c1_i32 = arith.constant 1 : i32
    %70 = arith.select %69, %c1_i32, %c16_i32 : i32
    %71 = vector.broadcast %70 : i32 to vector<32x1xi32>
    %72 = arith.remsi %68, %71 : vector<32x1xi32>
    %c0_i32_40 = arith.constant 0 : i32
    %73 = vector.broadcast %c0_i32_40 : i32 to vector<32x1xi32>
    %74 = arith.cmpi ne, %72, %73 : vector<32x1xi32>
    %c0_i32_41 = arith.constant 0 : i32
    %75 = vector.broadcast %c0_i32_41 : i32 to vector<32x1xi32>
    %76 = arith.cmpi slt, %72, %75 : vector<32x1xi32>
    %c0_i32_42 = arith.constant 0 : i32
    %77 = arith.cmpi slt, %70, %c0_i32_42 : i32
    %78 = vector.broadcast %77 : i1 to vector<32x1xi1>
    %79 = vector.broadcast %78 : vector<32x1xi1> to vector<32x1xi1>
    %80 = arith.xori %76, %79 : vector<32x1xi1>
    %81 = arith.andi %80, %74 : vector<32x1xi1>
    %82 = vector.broadcast %70 : i32 to vector<32x1xi32>
    %83 = arith.addi %72, %82 : vector<32x1xi32>
    %84 = arith.select %81, %83, %72 : vector<32x1xi1>, vector<32x1xi32>
    %85 = vector.extract_strided_slice %66 {offsets = [0, 0], sizes = [31, 128], strides = [1, 1]} : vector<32x128xbf16> to vector<31x128xbf16>
    %86 = tpu.concatenate %67, %85 in 0 : vector<1x128xbf16>, vector<31x128xbf16> -> vector<32x128xbf16>
    %c1_i32_43 = arith.constant 1 : i32
    %87 = vector.broadcast %c1_i32_43 : i32 to vector<32x1xi32>
    %88 = arith.cmpi sge, %84, %87 : vector<32x1xi32>
    %cst_44 = arith.constant 0.000000e+00 : bf16
    %89 = vector.broadcast %cst_44 : bf16 to vector<32x128xbf16>
    %90 = vector.shape_cast %88 : vector<32x1xi1> to vector<32x1xi1>
    %91 = vector.broadcast %90 : vector<32x1xi1> to vector<32x128xi1>
    %92 = arith.select %91, %86, %89 : vector<32x128xi1>, vector<32x128xbf16>
    %93 = vector.extract_strided_slice %66 {offsets = [1, 0], sizes = [31, 128], strides = [1, 1]} : vector<32x128xbf16> to vector<31x128xbf16>
    %94 = tpu.concatenate %93, %67 in 0 : vector<31x128xbf16>, vector<1x128xbf16> -> vector<32x128xbf16>
    %c15_i32 = arith.constant 15 : i32
    %95 = vector.broadcast %c15_i32 : i32 to vector<32x1xi32>
    %96 = arith.cmpi slt, %84, %95 : vector<32x1xi32>
    %cst_45 = arith.constant 0.000000e+00 : bf16
    %97 = vector.broadcast %cst_45 : bf16 to vector<32x128xbf16>
    %98 = vector.shape_cast %96 : vector<32x1xi1> to vector<32x1xi1>
    %99 = vector.broadcast %98 : vector<32x1xi1> to vector<32x128xi1>
    %100 = arith.select %99, %94, %97 : vector<32x128xi1>, vector<32x128xbf16>
    %c0_46 = arith.constant 0 : index
    %c0_47 = arith.constant 0 : index
    %c0_48 = arith.constant 0 : index
    %101 = vector.load %arg2[%c0_46, %c0_47, %c0_48] : memref<3x128x128xbf16, #tpu.memory_space<vmem>>, vector<1x128x128xbf16>
    %102 = vector.shape_cast %101 : vector<1x128x128xbf16> to vector<128x128xbf16>
    %cst_49 = arith.constant dense<0.000000e+00> : vector<32x128xf32>
    %103 = tpu.matmul %92, %102, %cst_49 {dimension_numbers = #tpu.dot_dimension_numbers<[1], [0], [0], [1], [0, 0, 1, 1], [], []>} : vector<32x128xbf16>, vector<128x128xbf16>, vector<32x128xf32> -> vector<32x128xf32>
    %c1 = arith.constant 1 : index
    %c0_50 = arith.constant 0 : index
    %c0_51 = arith.constant 0 : index
    %104 = vector.load %arg2[%c1, %c0_50, %c0_51] : memref<3x128x128xbf16, #tpu.memory_space<vmem>>, vector<1x128x128xbf16>
    %105 = vector.shape_cast %104 : vector<1x128x128xbf16> to vector<128x128xbf16>
    %cst_52 = arith.constant dense<0.000000e+00> : vector<32x128xf32>
    %106 = tpu.matmul %66, %105, %cst_52 {dimension_numbers = #tpu.dot_dimension_numbers<[1], [0], [0], [1], [0, 0, 1, 1], [], []>} : vector<32x128xbf16>, vector<128x128xbf16>, vector<32x128xf32> -> vector<32x128xf32>
    %107 = arith.addf %103, %106 : vector<32x128xf32>
    %c2 = arith.constant 2 : index
    %c0_53 = arith.constant 0 : index
    %c0_54 = arith.constant 0 : index
    %108 = vector.load %arg2[%c2, %c0_53, %c0_54] : memref<3x128x128xbf16, #tpu.memory_space<vmem>>, vector<1x128x128xbf16>
    %109 = vector.shape_cast %108 : vector<1x128x128xbf16> to vector<128x128xbf16>
    %cst_55 = arith.constant dense<0.000000e+00> : vector<32x128xf32>
    %110 = tpu.matmul %100, %109, %cst_55 {dimension_numbers = #tpu.dot_dimension_numbers<[1], [0], [0], [1], [0, 0, 1, 1], [], []>} : vector<32x128xbf16>, vector<128x128xbf16>, vector<32x128xf32> -> vector<32x128xf32>
    %111 = arith.addf %107, %110 : vector<32x128xf32>
    %c0_56 = arith.constant 0 : index
    %c0_57 = arith.constant 0 : index
    %112 = vector.load %arg8[%c0_56, %c0_57] : memref<1x8xf32, #tpu.memory_space<vmem>>, vector<1x8xf32>
    %c0_58 = arith.constant 0 : index
    %c0_59 = arith.constant 0 : index
    %113 = vector.load %arg9[%c0_58, %c0_59] : memref<1x8xf32, #tpu.memory_space<vmem>>, vector<1x8xf32>
    %c0_60 = arith.constant 0 : index
    %c0_61 = arith.constant 0 : index
    %114 = vector.load %arg12[%c0_60, %c0_61] : memref<128x8xf32, #tpu.memory_space<vmem>>, vector<128x8xf32>
    %c0_62 = arith.constant 0 : index
    %c0_63 = arith.constant 0 : index
    %115 = vector.load %arg13[%c0_62, %c0_63] : memref<8x128xf32, #tpu.memory_space<vmem>>, vector<8x128xf32>
    %cst_64 = arith.constant dense<0.000000e+00> : vector<128xf32>
    %116 = vector.multi_reduction <add>, %111, %cst_64 [0] : vector<32x128xf32> to vector<128xf32>
    %117 = vector.shape_cast %116 : vector<128xf32> to vector<1x128xf32>
    %118 = arith.mulf %111, %111 : vector<32x128xf32>
    %cst_65 = arith.constant dense<0.000000e+00> : vector<128xf32>
    %119 = vector.multi_reduction <add>, %118, %cst_65 [0] : vector<32x128xf32> to vector<128xf32>
    %120 = vector.shape_cast %119 : vector<128xf32> to vector<1x128xf32>
    %cst_66 = arith.constant dense<0.000000e+00> : vector<1x8xf32>
    %121 = tpu.matmul %117, %114, %cst_66 {dimension_numbers = #tpu.dot_dimension_numbers<[1], [0], [0], [1], [0, 0, 1, 1], [], []>} : vector<1x128xf32>, vector<128x8xf32>, vector<1x8xf32> -> vector<1x8xf32>
    %cst_67 = arith.constant 0.001953125 : f32
    %122 = vector.broadcast %cst_67 : f32 to vector<1x8xf32>
    %123 = arith.mulf %121, %122 : vector<1x8xf32>
    %cst_68 = arith.constant dense<0.000000e+00> : vector<1x8xf32>
    %124 = tpu.matmul %120, %114, %cst_68 {dimension_numbers = #tpu.dot_dimension_numbers<[1], [0], [0], [1], [0, 0, 1, 1], [], []>} : vector<1x128xf32>, vector<128x8xf32>, vector<1x8xf32> -> vector<1x8xf32>
    %cst_69 = arith.constant 0.001953125 : f32
    %125 = vector.broadcast %cst_69 : f32 to vector<1x8xf32>
    %126 = arith.mulf %124, %125 : vector<1x8xf32>
    %127 = arith.mulf %123, %123 : vector<1x8xf32>
    %128 = arith.subf %126, %127 : vector<1x8xf32>
    %cst_70 = arith.constant 9.99999974E-6 : f32
    %129 = vector.broadcast %cst_70 : f32 to vector<1x8xf32>
    %130 = arith.addf %128, %129 : vector<1x8xf32>
    %131 = math.rsqrt %130 : vector<1x8xf32>
    %132 = arith.mulf %112, %131 : vector<1x8xf32>
    %133 = arith.mulf %123, %132 : vector<1x8xf32>
    %134 = arith.subf %113, %133 : vector<1x8xf32>
    %cst_71 = arith.constant dense<0.000000e+00> : vector<1x128xf32>
    %135 = tpu.matmul %132, %115, %cst_71 {dimension_numbers = #tpu.dot_dimension_numbers<[1], [0], [0], [1], [0, 0, 1, 1], [], []>} : vector<1x8xf32>, vector<8x128xf32>, vector<1x128xf32> -> vector<1x128xf32>
    %cst_72 = arith.constant dense<0.000000e+00> : vector<1x128xf32>
    %136 = tpu.matmul %134, %115, %cst_72 {dimension_numbers = #tpu.dot_dimension_numbers<[1], [0], [0], [1], [0, 0, 1, 1], [], []>} : vector<1x8xf32>, vector<8x128xf32>, vector<1x128xf32> -> vector<1x128xf32>
    %137 = vector.broadcast %135 : vector<1x128xf32> to vector<32x128xf32>
    %138 = arith.mulf %111, %137 : vector<32x128xf32>
    %139 = vector.broadcast %136 : vector<1x128xf32> to vector<32x128xf32>
    %140 = arith.addf %138, %139 : vector<32x128xf32>
    %cst_73 = arith.constant 0.000000e+00 : f32
    %141 = vector.broadcast %cst_73 : f32 to vector<32x128xf32>
    %142 = arith.maximumf %140, %141 : vector<32x128xf32>
    %143 = arith.truncf %142 : vector<32x128xf32> to vector<32x128xbf16>
    %c0_74 = arith.constant 0 : index
    %c0_75 = arith.constant 0 : index
    %144 = vector.load %arg3[%c0_74, %c0_75] : memref<128x512xbf16, #tpu.memory_space<vmem>>, vector<128x512xbf16>
    %cst_76 = arith.constant dense<0.000000e+00> : vector<32x512xf32>
    %145 = tpu.matmul %143, %144, %cst_76 {dimension_numbers = #tpu.dot_dimension_numbers<[1], [0], [0], [1], [0, 0, 1, 1], [], []>} : vector<32x128xbf16>, vector<128x512xbf16>, vector<32x512xf32> -> vector<32x512xf32>
    %c0_77 = arith.constant 0 : index
    %c0_78 = arith.constant 0 : index
    %146 = vector.load %arg0[%c0_77, %c0_78] : memref<32x512xf32, #tpu.memory_space<vmem>>, vector<32x512xf32>
    %147 = arith.addf %145, %146 : vector<32x512xf32>
    %c0_79 = arith.constant 0 : index
    %c0_80 = arith.constant 0 : index
    %148 = vector.load %arg14[%c0_79, %c0_80] : memref<32x512xf32, #tpu.memory_space<vmem>>, vector<32x512xf32>
    tpu.vector_store %arg14[%c0_79, %c0_80], %147 {strides = array<i32>} : memref<32x512xf32, #tpu.memory_space<vmem>>, vector<32x512xf32>,
    return
  }
}

</mosaic_0001>

<bundles_post_ra>
// kernel: _bottleneck_lane_dense.1
= control target key start
LH: loop header
LB: loop body
LE: loop exit
PB: predicated region body
PF: predicated region fallthrough
CT: control target
= control target key end

     0   :  { %19 = vsyncpa [#allocation3], 0  ;;  %s4085_s0 = inlined_call_operand.vmem [shape: f32[32,512], index: 0, kind: input, shape index: {}]   ;;  %s4086_s1 = inlined_call_operand.vmem [shape: bf16[512,128], index: 1, kind: input, shape index: {}]   ;;  %s4087_s2 = inlined_call_operand.hbm [shape: bf16[3,128,128], index: 2, kind: input, shape index: {}]   ;;  %s4088_s3 = inlined_call_operand.vmem [shape: bf16[128,512], index: 3, kind: input, shape index: {}]   ;;  %s4089_s4 = inlined_call_operand.vmem [shape: f32[1,32], index: 4, kind: input, shape index: {}]   ;;  %s4090_s5 = inlined_call_operand.vmem [shape: f32[1,32], index: 5, kind: input, shape index: {}]   ;;  %s4091_s6 = inlined_call_operand.vmem [shape: f32[1,8], index: 6, kind: input, shape index: {}]   ;;  %s4092_s7 = inlined_call_operand.hbm [shape: f32[1,8], index: 7, kind: input, shape index: {}]   ;;  %s4093_s8 = inlined_call_operand.hbm [shape: f32[1,8], index: 8, kind: input, shape index: {}]   ;;  %s4094_s9 = inlined_call_operand.hbm [shape: f32[1,8], index: 9, kind: input, shape index: {}]   ;;  %s4095_s10 = inlined_call_operand.vmem [shape: f32[512,32], index: 10, kind: input, shape index: {}]   ;;  %s4096_s11 = inlined_call_operand.hbm [shape: f32[32,512], index: 11, kind: input, shape index: {}]   ;;  %s4097_s12 = inlined_call_operand.vmem [shape: f32[128,8], index: 12, kind: input, shape index: {}]   ;;  %s4098_s13 = inlined_call_operand.vmem [shape: f32[8,128], index: 13, kind: input, shape index: {}]   ;;  %s4099_s14 = inlined_call_operand.hbm [shape: f32[32,512], index: 14, kind: output, shape index: {}]  }
   0x1   :  { %20 = vsyncpa [#allocation6], 0 }
   0x2   :  { %21 = vsyncpa [#allocation9], 0  ;;  %s53_s15 = sshll.u32 %s4092_s7, 4  ;;  %s54_s15 = int_to_ptr.hbm [resolvable:$true] %s53_s15 }
   0x3   :  { %22 = vsyncpa [#allocation4], 0  ;;  %s2753_s16 = smov [#allocation5]   ;;  %s75_s20 = sshll.u32 %s4094_s9, 4  ;;  %s76_s20 = int_to_ptr.hbm [resolvable:$true] %s75_s20 }
   0x4   :  { %s55_s17 = sshll.u32 %s2753_s16, 4  ;;  %s2754_s21 = smov [#allocation8]   ;;  %s56_s17 = int_to_ptr.vmem [resolvable:$true] %s55_s17 }
   0x5   :  { %58 = dma.hbm_to_vmem [thread:$0]  %s54_s15, 16, %s56_s17, [#allocation6]  }
   0x6   :  { %s77_s22 = sshll.u32 %s2754_s21, 4  ;;  %s31_s25 = sshll.u32 %s4087_s2, 4  ;;  %s78_s22 = int_to_ptr.vmem [resolvable:$true] %s77_s22  ;;  %s32_s25 = int_to_ptr.hbm [resolvable:$true] %s31_s25 }
   0x7   :  { %80 = dma.hbm_to_vmem [thread:$0]  %s76_s20, 16, %s78_s22, [#allocation9]  }
   0x8   :  { %s2755_s7 = smov [#allocation2]   ;;  %s64_s29 = sshll.u32 %s4093_s8, 4  ;;  %s65_s29 = int_to_ptr.hbm [resolvable:$true] %s64_s29 }
   0x9   :  { %s33_s26 = sshll.u32 %s2755_s7, 4  ;;  %s2756_s30 = smov 64   ;;  %s34_s26 = int_to_ptr.vmem [resolvable:$true] %s33_s26 }
   0xa   :  { %s2757_s9 = smov 4   ;;  %s2758_s15 = smov [#allocation7]  }
   0xb   :  { %39 = dma.hbm_to_vmem [thread:$0]  %s32_s25, 3072, %s34_s26, [#allocation3], %s2756_s30, %s2756_s30, %s2757_s9  }
   0xc   :  { %s66_s16 = sshll.u32 %s2758_s15, 4  ;;  %s87_s2 = sshll.u32 %s4096_s11, 4  ;;  %s67_s16 = int_to_ptr.vmem [resolvable:$true] %s66_s16  ;;  %s88_s2 = int_to_ptr.hbm [resolvable:$true] %s87_s2 }
   0xd   :  { %69 = dma.hbm_to_vmem [thread:$0]  %s65_s29, 16, %s67_s16, [#allocation6]  }
   0xe   :  { %s2759_s19 = smov [#allocation10]   ;;  %s2760_s21 = smov 512  }
   0xf   :  { %s89_s20 = sshll.u32 %s2759_s19, 4  ;;  %s2761_s22 = smov 32   ;;  %s90_s20 = int_to_ptr.vmem [resolvable:$true] %s89_s20 }
  0x10   :  { %95 = dma.hbm_to_vmem [thread:$0]  %s88_s2, 2048, %s90_s20, [#allocation9], %s2760_s21, %s2760_s21, %s2761_s22  }
  0x11   :  { %2745 = dma.done.wait [#allocation3], 3072  }
  0x12   :  { %2746 = vsyncadd [#allocation3], 4294964224 }
  0x13   :  { %2747 = dma.done.wait [#allocation6], 32  }
  0x14   :  { %2748 = vsyncadd [#allocation6], 4294967264 }
  0x15   :  { %2749 = dma.done.wait [#allocation9], 2064  }
  0x16   :  { %2750 = vsyncadd [#allocation9], 4294965232  ;;  %v2861_v0 = vld [vmem:[%s4095_s10 + $0x178] sm:$0xff]  ;;  %v2866_v1 = vld [vmem:[%s4095_s10 + $0x170] sm:$0xff]  ;;  %vm487_vm3 = vcmask 261120   ;;  %vm1149_vm7 = vcmask 64512  }
  0x17   :  { %v2871_v2 = vld [vmem:[%s4095_s10 + $0x1f8] sm:$0xff]  ;;  %349 = vmatpush.msra.mxu2 %v2861_v0  ;;  %v2888_v5 = vld [vmem:[%s4095_s10 + $0x168] sm:$0xff]  ;;  %v2895_v6 = vld [vmem:[%s4095_s10 + $0x1f0] sm:$0xff]  ;;  %vm2762_vm11 = vmmov 1   ;;  %vm1277_vm14 = vsmask.f32 256 }
  0x18   :  { %369 = vmatpush.msra.mxu3 %v2871_v2  ;;  %v2878_v3 = vld [vmem:[%s4095_s10 + $0x78] sm:$0xff]  ;;  %v2900_v7 = vld [vmem:[%s4095_s10 + $0x70] sm:$0xff]  ;;  %v2912_v9 = vld [vmem:[%s4095_s10 + $0x1e8] sm:$0xff]  ;;  %vm1295_vm15 = vcmask 1040384   ;;  %s2084_s24 = sshll.u32 %s4099_s14, 4  ;;  %s2085_s24 = int_to_ptr.hbm [resolvable:$true] %s2084_s24 }
  0x19   :  { %v2883_v4 = vld [vmem:[%s4095_s10 + $0xf8] sm:$0xff]  ;;  %309 = vmatpush.msra.mxu0 %v2878_v3  ;;  %v2905_v8 = vld [vmem:[%s4095_s10 + $0xf0] sm:$0xff]  ;;  %350 = vmatpush.msra.mxu2 %v2866_v1  ;;  %v2917_v10 = vld [vmem:[%s4095_s10 + $0x68] sm:$0xff] }
  0x1a   :  { %329 = vmatpush.msra.mxu1 %v2883_v4  ;;  %370 = vmatpush.msra.mxu3 %v2895_v6  ;;  %v2924_v11 = vld [vmem:[%s4095_s10 + $0x160] sm:$0xff]  ;;  %v2929_v12 = vld [vmem:[%s4095_s10 + $0xe8] sm:$0xff]  ;;  %v2953_v16 = vld [vmem:[%s4095_s10 + $0x158] sm:$0xff] }
  0x1b   :  { %310 = vmatpush.msra.mxu0 %v2900_v7  ;;  %v2934_v13 = vld [vmem:[%s4095_s10 + $0x1e0] sm:$0xff]  ;;  %351 = vmatpush.msra.mxu2 %v2888_v5  ;;  %v2958_v17 = vld [vmem:[%s4095_s10 + $0x1d8] sm:$0xff]  ;;  %v2977_v20 = vld [vmem:[%s4095_s10 + $0x150] sm:$0xff] }
  0x1c   :  { %330 = vmatpush.msra.mxu1 %v2905_v8  ;;  %371 = vmatpush.msra.mxu3 %v2912_v9  ;;  %v2941_v14 = vld [vmem:[%s4095_s10 + $0x60] sm:$0xff]  ;;  %v2965_v18 = vld [vmem:[%s4095_s10 + $0x58] sm:$0xff]  ;;  %v2982_v21 = vld [vmem:[%s4095_s10 + $0x1d0] sm:$0xff] }
  0x1d   :  { %v2946_v15 = vld [vmem:[%s4095_s10 + $0xe0] sm:$0xff]  ;;  %311 = vmatpush.msra.mxu0 %v2917_v10  ;;  %352 = vmatpush.msra.mxu2 %v2924_v11  ;;  %v2970_v19 = vld [vmem:[%s4095_s10 + $0xd8] sm:$0xff]  ;;  %v2989_v22 = vld [vmem:[%s4095_s10 + $0x50] sm:$0xff] }
  0x1e   :  { %331 = vmatpush.msra.mxu1 %v2929_v12  ;;  %372 = vmatpush.msra.mxu3 %v2934_v13  ;;  %v2994_v23 = vld [vmem:[%s4095_s10 + $0xd0] sm:$0xff]  ;;  %v3001_v24 = vld [vmem:[%s4095_s10 + $0x148] sm:$0xff]  ;;  %v3025_v28 = vld [vmem:[%s4095_s10 + $0x140] sm:$0xff] }
  0x1f   :  { %312 = vmatpush.msra.mxu0 %v2941_v14  ;;  %353 = vmatpush.msra.mxu2 %v2953_v16  ;;  %v3006_v25 = vld [vmem:[%s4095_s10 + $0x1c8] sm:$0xff]  ;;  %v3030_v29 = vld [vmem:[%s4095_s10 + $0x1c0] sm:$0xff]  ;;  %v3049_v32 = vld [vmem:[%s4095_s10 + $0x138] sm:$0xff] }
  0x20   :  { %332 = vmatpush.msra.mxu1 %v2946_v15  ;;  %373 = vmatpush.msra.mxu3 %v2958_v17  ;;  %v3013_v26 = vld [vmem:[%s4095_s10 + $0x48] sm:$0xff]  ;;  %v3037_v30 = vld [vmem:[%s4095_s10 + $0x40] sm:$0xff]  ;;  %v3054_v33 = vld [vmem:[%s4095_s10 + $0x1b8] sm:$0xff] }
  0x21   :  { %313 = vmatpush.msra.mxu0 %v2965_v18  ;;  %354 = vmatpush.msra.mxu2 %v2977_v20  ;;  %v3018_v27 = vld [vmem:[%s4095_s10 + $0xc8] sm:$0xff]  ;;  %v3042_v31 = vld [vmem:[%s4095_s10 + $0xc0] sm:$0xff]  ;;  %v3061_v34 = vld [vmem:[%s4095_s10 + $0x38] sm:$0xff] }
  0x22   :  { %333 = vmatpush.msra.mxu1 %v2970_v19  ;;  %374 = vmatpush.msra.mxu3 %v2982_v21  ;;  %4134 = vst [vmem:[#allocation16_spill] sm:$0xff] %v3061_v34  ;;  %v3066_v35 = vld [vmem:[%s4095_s10 + $0xb8] sm:$0xff]  ;;  %v3073_v36 = vld [vmem:[%s4095_s10 + $0x130] sm:$0xff]  ;;  %v3097_v40 = vld [vmem:[%s4095_s10 + $0x128] sm:$0xff] }
  0x23   :  { %314 = vmatpush.msra.mxu0 %v2989_v22  ;;  %355 = vmatpush.msra.mxu2 %v3001_v24  ;;  %4135 = vst [vmem:[#allocation17_spill] sm:$0xff] %v3066_v35  ;;  %v3078_v37 = vld [vmem:[%s4095_s10 + $0x1b0] sm:$0xff]  ;;  %v3102_v41 = vld [vmem:[%s4095_s10 + $0x120] sm:$0xff]  ;;  %v3107_v42 = vld [vmem:[%s4095_s10 + $0x1a8] sm:$0xff] }
  0x24   :  { %334 = vmatpush.msra.mxu1 %v2994_v23  ;;  %375 = vmatpush.msra.mxu3 %v3006_v25  ;;  %4136 = vst [vmem:[#allocation18_spill] sm:$0xff] %v3073_v36  ;;  %v3085_v38 = vld [vmem:[%s4095_s10 + $0x30] sm:$0xff]  ;;  %v3114_v43 = vld [vmem:[%s4095_s10 + $0x28] sm:$0xff]  ;;  %v3124_v45 = vld [vmem:[%s4095_s10 + $0x1a0] sm:$0xff] }
  0x25   :  { %315 = vmatpush.msra.mxu0 %v3013_v26  ;;  %356 = vmatpush.msra.mxu2 %v3025_v28  ;;  %4137 = vst [vmem:[#allocation19_spill] sm:$0xff] %v3078_v37  ;;  %v3090_v39 = vld [vmem:[%s4095_s10 + $0xb0] sm:$0xff]  ;;  %v3119_v44 = vld [vmem:[%s4095_s10 + $0xa8] sm:$0xff]  ;;  %v3131_v46 = vld [vmem:[%s4095_s10 + $0x118] sm:$0xff] }
  0x26   :  { %335 = vmatpush.msra.mxu1 %v3018_v27  ;;  %376 = vmatpush.msra.mxu3 %v3030_v29  ;;  %4138 = vst [vmem:[#allocation20_spill] sm:$0xff] %v3085_v38  ;;  %v3136_v47 = vld [vmem:[%s4095_s10 + $0x20] sm:$0xff]  ;;  %v3146_v49 = vld [vmem:[%s4095_s10 + $0x198] sm:$0xff]  ;;  %v3163_v52 = vld [vmem:[%s4085_s0 + $0x10] sm:$0xff] }
  0x27   :  { %316 = vmatpush.msra.mxu0 %v3037_v30  ;;  %357 = vmatpush.msra.mxu2 %v3049_v32  ;;  %4139 = vst [vmem:[#allocation21_spill] sm:$0xff] %v3090_v39  ;;  %v3141_v48 = vld [vmem:[%s4095_s10 + $0xa0] sm:$0xff]  ;;  %v3153_v50 = vld [vmem:[%s4095_s10 + $0x18] sm:$0xff]  ;;  %v3168_v53 = vld [vmem:[%s4085_s0 + $0x30] sm:$0xff]  ;;  %v259_v63 = vmul.f32 %v3163_v52, %v3163_v52 }
  0x28   :  { %336 = vmatpush.msra.mxu1 %v3042_v31  ;;  %377 = vmatpush.msra.mxu3 %v3054_v33  ;;  %4140 = vst [vmem:[#allocation22_spill] sm:$0xff] %v3097_v40  ;;  %v3158_v51 = vld [vmem:[%s4095_s10 + $0x98] sm:$0xff]  ;;  %v3175_v54 = vld [vmem:[%s4095_s10 + $0x110] sm:$0xff]  ;;  %v239_v57 = vadd.f32 %v3168_v53, %v3163_v52  ;;  %vm1311_vm12 = vmpackc.low %vm2762_vm11, %vm2762_vm11  ;;  %vm1340_vm11 = vsmask.f32 7424 }
  0x29   :  { %317 = vmatpush.msra.mxu0 %v3061_v34  ;;  %4141 = vst [vmem:[#allocation23_spill] sm:$0xff] %v3102_v41  ;;  %358 = vmatpush.msra.mxu2 %v3073_v36  ;;  %v3180_v55 = vld [vmem:[%s4095_s10 + $0x190] sm:$0xff]  ;;  %v3192_v58 = vld [vmem:[%s4085_s0 + $0x18] sm:$0xff]  ;;  %v3328_v36 = vld [vmem:[%s4085_s0 + $0x68] sm:$0xff] }
  0x2a   :  { %337 = vmatpush.msra.mxu1 %v3066_v35  ;;  %4142 = vst [vmem:[#allocation24_spill] sm:$0xff] %v3107_v42  ;;  %378 = vmatpush.msra.mxu3 %v3078_v37  ;;  %v3185_v56 = vld [vmem:[%s4085_s0 + $0x50] sm:$0xff]  ;;  %v3209_v61 = vld [vmem:[%s4085_s0 + $0x38] sm:$0xff]  ;;  %v3293_v37 = vld [vmem:[%s4095_s10 + $0x8] sm:$0xff] }
  0x2b   :  { %4143 = vst [vmem:[#allocation25_spill] sm:$0xff] %v3114_v43  ;;  %318 = vmatpush.msra.mxu0 %v3085_v38  ;;  %359 = vmatpush.msra.mxu2 %v3097_v40  ;;  %v3199_v59 = vld [vmem:[%s4095_s10 + $0x10] sm:$0xff]  ;;  %v3214_v62 = vld [vmem:[%s4085_s0 + $0x58] sm:$0xff] }
  0x2c   :  { %4144 = vst [vmem:[#allocation26_spill] sm:$0xff] %v3119_v44  ;;  %338 = vmatpush.msra.mxu1 %v3090_v39  ;;  %379 = vmatpush.msra.mxu3 %v3107_v42  ;;  %v3204_v60 = vld [vmem:[%s4085_s0 + $0x70] sm:$0xff]  ;;  %v3257_v39 = vld [vmem:[%s4085_s0 + $0x8] sm:$0xff]  ;;  %v3276_v38 = vld [vmem:[%s4085_s0 + $0x78] sm:$0xff] }
  0x2d   :  { %4145 = vst [vmem:[#allocation27_spill] sm:$0xff] %v3124_v45  ;;  %319 = vmatpush.msra.mxu0 %v3114_v43  ;;  %360 = vmatpush.msra.mxu2 %v3102_v41  ;;  %v248_v43 = vadd.f32 %v3209_v61, %v3192_v58  ;;  %v3231_v41 = vld [vmem:[%s4085_s0] sm:$0xff] }
  0x2e   :  { %4146 = vst [vmem:[#allocation28_spill] sm:$0xff] %v3131_v46  ;;  %339 = vmatpush.msra.mxu1 %v3119_v44  ;;  %380 = vmatpush.msra.mxu3 %v3124_v45  ;;  %v3223_v45 = vld [vmem:[%s4095_s10 + $0x108] sm:$0xff]  ;;  %v240_v44 = vadd.f32 %v239_v57, %v3185_v56  ;;  %v263_v57 = vmul.f32 %v3168_v53, %v3168_v53 }
  0x2f   :  { %4147 = vst [vmem:[#allocation29_spill] sm:$0xff] %v3136_v47  ;;  %320 = vmatpush.msra.mxu0 %v3136_v47  ;;  %361 = vmatpush.msra.mxu2 %v3131_v46  ;;  %v3250_v47 = vld [vmem:[%s4095_s10 + $0x90] sm:$0xff]  ;;  %v3271_v46 = vld [vmem:[%s4095_s10 + $0x188] sm:$0xff]  ;;  %v249_v40 = vadd.f32 %v248_v43, %v3214_v62 }
  0x30   :  { %4148 = vst [vmem:[#allocation30_spill] sm:$0xff] %v3141_v48  ;;  %340 = vmatpush.msra.mxu1 %v3141_v48  ;;  %v3241_v48 = vld [vmem:[%s4085_s0 + $0x40] sm:$0xff]  ;;  %381 = vmatpush.msra.mxu3 %v3146_v49  ;;  %v3298_v43 = vld [vmem:[%s4095_s10 + $0x88] sm:$0xff]  ;;  %v241_v35 = vadd.f32 %v240_v44, %v3204_v60 }
  0x31   :  { %4149 = vst [vmem:[#allocation31_spill] sm:$0xff] %v3146_v49  ;;  %v260_v49 = vmul.f32 %v3192_v58, %v3192_v58  ;;  %321 = vmatpush.msra.mxu0 %v3153_v50  ;;  %362 = vmatpush.msra.mxu2 %v3175_v54  ;;  %v3317_v44 = vld [vmem:[%s4085_s0 + $0x60] sm:$0xff] }
  0x32   :  { %4150 = vst [vmem:[#allocation32_spill] sm:$0xff] %v3153_v50  ;;  %341 = vmatpush.msra.mxu1 %v3158_v51  ;;  %v264_v50 = vmul.f32 %v3209_v61, %v3209_v61  ;;  %382 = vmatpush.msra.mxu3 %v3180_v55 }
  0x33   :  { %4151 = vst [vmem:[#allocation33_spill] sm:$0xff] %v3158_v51  ;;  %322 = vmatpush.msra.mxu0 %v3199_v59  ;;  %363 = vmatpush.msra.mxu2 %v3223_v45 }
  0x34   :  { %4152 = vst [vmem:[#allocation34_spill] sm:$0xff] %v3163_v52  ;;  %v3236_v52 = vld [vmem:[%s4085_s0 + $0x20] sm:$0xff]  ;;  %342 = vmatpush.msra.mxu1 %v3250_v47  ;;  %383 = vmatpush.msra.mxu3 %v3271_v46 }
  0x35   :  { %4153 = vst [vmem:[#allocation35_spill] sm:$0xff] %v3168_v53  ;;  %v221_v42 = vadd.f32 %v3236_v52, %v3231_v41  ;;  %v3262_v53 = vld [vmem:[%s4085_s0 + $0x28] sm:$0xff]  ;;  %323 = vmatpush.msra.mxu0 %v3293_v37 }
  0x36   :  { %4154 = vst [vmem:[#allocation36_spill] sm:$0xff] %v3175_v54  ;;  %v230_v51 = vadd.f32 %v3262_v53, %v3257_v39  ;;  %v250_v54 = vadd.f32 %v249_v40, %v3276_v38  ;;  %343 = vmatpush.msra.mxu1 %v3298_v43  ;;  %v268_v40 = vmul.f32 %v3214_v62, %v3214_v62 }
  0x37   :  { %4155 = vst [vmem:[#allocation37_spill] sm:$0xff] %v3180_v55  ;;  %v222_v34 = vadd.f32 %v221_v42, %v3241_v48  ;;  %v3312_v55 = vld [vmem:[%s4095_s10 + $0x180] sm:$0xff] }
  0x38   :  { %4156 = vst [vmem:[#allocation38_spill] sm:$0xff] %v3185_v56  ;;  %384 = vmatpush.msra.mxu3 %v3312_v55 }
  0x39   :  { %4157 = vst [vmem:[#allocation39_spill] sm:$0xff] %v3192_v58  ;;  %v3282_v58 = vld [vmem:[%s4085_s0 + $0x48] sm:$0xff] }
  0x3a   :  { %4158 = vst [vmem:[#allocation40_spill] sm:$0xff] %v3199_v59  ;;  %v231_v42 = vadd.f32 %v230_v51, %v3282_v58  ;;  %v291_v59 = vadd.f32 %v263_v57, %v259_v63  ;;  %v3335_v51 = vld [vmem:[%s4095_s10] sm:$0xff]  ;;  %v300_v57 = vadd.f32 %v264_v50, %v260_v49  ;;  %450 = vmatpush.msrb.mxu3 %v2871_v2 }
  0x3b   :  { %4159 = vst [vmem:[#allocation41_spill] sm:$0xff] %v3204_v60  ;;  %v3340_v63 = vld [vmem:[%s4095_s10 + $0x80] sm:$0xff]  ;;  %v271_v49 = vmul.f32 %v3204_v60, %v3204_v60  ;;  %324 = vmatpush.msra.mxu0 %v3335_v51 }
  0x3c   :  { %4160 = vst [vmem:[#allocation42_spill] sm:$0xff] %v3209_v61  ;;  %v3307_v61 = vld [vmem:[%s4095_s10 + $0x100] sm:$0xff]  ;;  %344 = vmatpush.msra.mxu1 %v3340_v63  ;;  %451 = vmatpush.msrb.mxu3 %v2895_v6 }
  0x3d   :  { %4161 = vst [vmem:[#allocation43_spill] sm:$0xff] %v3214_v62  ;;  %364 = vmatpush.msra.mxu2 %v3307_v61  ;;  %v232_v62 = vadd.f32 %v231_v42, %v3328_v36  ;;  %390 = vmatpush.msrb.mxu0 %v2878_v3 }
  0x3e   :  { %4162 = vst [vmem:[#allocation44_spill] sm:$0xff] %v3231_v41  ;;  %410 = vmatpush.msrb.mxu1 %v2883_v4  ;;  %452 = vmatpush.msrb.mxu3 %v2912_v9 }
  0x3f   :  { %4163 = vst [vmem:[#allocation45_spill] sm:$0xff] %v3241_v48  ;;  %430 = vmatpush.msrb.mxu2 %v2861_v0  ;;  %v272_v0 = vmul.f32 %v3276_v38, %v3276_v38  ;;  %391 = vmatpush.msrb.mxu0 %v2900_v7  ;;  %v233_v60 = vrot.slane %v232_v62, 4 }
  0x40   :  { %4164 = vst [vmem:[#allocation46_spill] sm:$0xff] %v3250_v47  ;;  %v267_v47 = vmul.f32 %v3185_v56, %v3185_v56  ;;  %v242_v56 = vrot.slane %v241_v35, 4  ;;  %411 = vmatpush.msrb.mxu1 %v2905_v8  ;;  %453 = vmatpush.msrb.mxu3 %v2934_v13  ;;  %v262_v8 = vmul.f32 %v3262_v53, %v3262_v53 }
  0x41   :  { %4165 = vst [vmem:[#allocation47_spill] sm:$0xff] %v3271_v46  ;;  %v261_v46 = vmul.f32 %v3236_v52, %v3236_v52  ;;  %431 = vmatpush.msrb.mxu2 %v2866_v1  ;;  %v269_v1 = vmul.f32 %v3317_v44, %v3317_v44  ;;  %392 = vmatpush.msrb.mxu0 %v2917_v10 }
  0x42   :  { %4166 = vst [vmem:[#allocation48_spill] sm:$0xff] %v3293_v37  ;;  %v257_v37 = vmul.f32 %v3231_v41, %v3231_v41  ;;  %v292_v50 = vadd.f32 %v291_v59, %v267_v47  ;;  %v265_v41 = vmul.f32 %v3241_v48, %v3241_v48  ;;  %v243_v2 = vadd.f32 %v242_v56, %v241_v35 }
  0x43   :  { %4167 = vst [vmem:[#allocation49_spill] sm:$0xff] %v3298_v43  ;;  %v223_v43 = vadd.f32 %v222_v34, %v3317_v44  ;;  %v251_v34 = vrot.slane %v250_v54, 4  ;;  %v301_v59 = vadd.f32 %v300_v57, %v268_v40  ;;  %432 = vmatpush.msrb.mxu2 %v2888_v5  ;;  %v258_v5 = vmul.f32 %v3257_v39, %v3257_v39  ;;  %v4172_v40 = vld [vmem:[#allocation22_spill] sm:$0xff]  ;;  %v4173_v57 = vld [vmem:[#allocation20_spill] sm:$0xff] }
  0x44   :  { %v273_v42 = vadd.f32 %v261_v46, %v257_v37  ;;  %v293_v48 = vadd.f32 %v292_v50, %v271_v49  ;;  %412 = vmatpush.msrb.mxu1 %v2929_v12  ;;  %v244_v6 = vrot.slane %v243_v2, 2  ;;  %393 = vmatpush.msrb.mxu0 %v2941_v14  ;;  %v234_v9 = vadd.f32 %v233_v60, %v232_v62  ;;  %v4170_v60 = vld [vmem:[#allocation17_spill] sm:$0xff]  ;;  %v4171_v62 = vld [vmem:[#allocation19_spill] sm:$0xff] }
  0x45   :  { %v224_v47 = vrot.slane %v223_v43, 4  ;;  %v252_v3 = vadd.f32 %v251_v34, %v250_v54  ;;  %433 = vmatpush.msrb.mxu2 %v2924_v11  ;;  %v302_v35 = vadd.f32 %v301_v59, %v272_v0  ;;  %v266_v37 = vmul.f32 %v3282_v58, %v3282_v58  ;;  %454 = vmatpush.msrb.mxu3 %v2958_v17  ;;  %v4174_v50 = vld [vmem:[#allocation21_spill] sm:$0xff]  ;;  %v4175_v34 = vld [vmem:[#allocation24_spill] sm:$0xff] }
  0x46   :  { %v274_v4 = vadd.f32 %v273_v42, %v265_v41  ;;  %v294_v11 = vrot.slane %v293_v48, 4  ;;  %413 = vmatpush.msrb.mxu1 %v2946_v15  ;;  %394 = vmatpush.msrb.mxu0 %v2965_v18  ;;  %v270_v13 = vmul.f32 %v3328_v36, %v3328_v36  ;;  %v245_v14 = vadd.f32 %v244_v6, %v243_v2  ;;  %v4177_v59 = vld [vmem:[#allocation25_spill] sm:$0xff]  ;;  %v4178_v42 = vld [vmem:[#allocation26_spill] sm:$0xff] }
  0x47   :  { %v225_v7 = vadd.f32 %v224_v47, %v223_v43  ;;  %434 = vmatpush.msrb.mxu2 %v2953_v16  ;;  %v253_v12 = vrot.slane %v252_v3, 2  ;;  %v282_v16 = vadd.f32 %v262_v8, %v258_v5  ;;  %455 = vmatpush.msrb.mxu3 %v2982_v21  ;;  %v303_v46 = vrot.slane %v302_v35, 4  ;;  %v4176_v47 = vld [vmem:[#allocation23_spill] sm:$0xff]  ;;  %v4181_v8 = vld [vmem:[#allocation29_spill] sm:$0xff] }
  0x48   :  { %v275_v10 = vadd.f32 %v274_v4, %v269_v1  ;;  %414 = vmatpush.msrb.mxu1 %v2970_v19  ;;  %395 = vmatpush.msrb.mxu0 %v2989_v22  ;;  %v235_v15 = vrot.slane %v234_v9, 2  ;;  %v295_v17 = vadd.f32 %v294_v11, %v293_v48  ;;  %v246_v21 = vrot.slane %v245_v14, 1  ;;  %v4179_v4 = vld [vmem:[#allocation28_spill] sm:$0xff]  ;;  %v4180_v5 = vld [vmem:[#allocation27_spill] sm:$0xff]  ;;  %v4182_v11 = vld [vmem:[#allocation30_spill] sm:$0xff] }
  0x49   :  { %435 = vmatpush.msrb.mxu2 %v2977_v20  ;;  %v226_v41 = vrot.slane %v225_v7, 2  ;;  %v283_v54 = vadd.f32 %v282_v16, %v266_v37  ;;  %456 = vmatpush.msrb.mxu3 %v3006_v25  ;;  %v254_v18 = vadd.f32 %v253_v12, %v252_v3  ;;  %v4184_v37 = vld [vmem:[#allocation31_spill] sm:$0xff] }
  0x4a   :  { %v276_v20 = vrot.slane %v275_v10, 4  ;;  %415 = vmatpush.msrb.mxu1 %v2994_v23  ;;  %396 = vmatpush.msrb.mxu0 %v3013_v26  ;;  %v236_v23 = vadd.f32 %v235_v15, %v234_v9  ;;  %v296_v48 = vrot.slane %v295_v17, 2  ;;  %v4187_v15 = vld [vmem:[#allocation37_spill] sm:$0xff] }
  0x4b   :  { %436 = vmatpush.msrb.mxu2 %v3001_v24  ;;  %v284_v19 = vadd.f32 %v283_v54, %v270_v13  ;;  %457 = vmatpush.msrb.mxu3 %v3030_v29  ;;  %v227_v22 = vadd.f32 %v226_v41, %v225_v7  ;;  %v304_v24 = vadd.f32 %v303_v46, %v302_v35  ;;  %v255_v26 = vrot.slane %v254_v18, 1  ;;  %v4185_v13 = vld [vmem:[#allocation32_spill] sm:$0xff]  ;;  %v4186_v41 = vld [vmem:[#allocation33_spill] sm:$0xff] }
  0x4c   :  { %416 = vmatpush.msrb.mxu1 %v3018_v27  ;;  %397 = vmatpush.msrb.mxu0 %v3037_v30  ;;  %v277_v25 = vadd.f32 %v276_v20, %v275_v10  ;;  %v4169_v27 = vld [vmem:[#allocation16_spill] sm:$0xff]  ;;  %v297_v49 = vadd.f32 %v296_v48, %v295_v17  ;;  %v4189_v20 = vld [vmem:[#allocation46_spill] sm:$0xff] }
  0x4d   :  { %437 = vmatpush.msrb.mxu2 %v3025_v28  ;;  %v285_v56 = vrot.slane %v284_v19, 4  ;;  %458 = vmatpush.msrb.mxu3 %v3054_v33  ;;  %v4168_v28 = vld [vmem:[#allocation18_spill] sm:$0xff]  ;;  %v228_v30 = vrot.slane %v227_v22, 1  ;;  %v305_v43 = vrot.slane %v304_v24, 2  ;;  %v256_v0 = vadd.f32 %v255_v26, %v254_v18  ;;  %v4183_v10 = vld [vmem:[#allocation36_spill] sm:$0xff]  ;;  %v4190_v18 = vld [vmem:[#allocation47_spill] sm:$0xff] }
  0x4e   :  { %417 = vmatpush.msrb.mxu1 %v3042_v31  ;;  %398 = vmatpush.msrb.mxu0 %v4169_v27  ;;  %v237_v31 = vrot.slane %v236_v23, 1  ;;  %v278_v33 = vrot.slane %v277_v25, 2  ;;  %v298_v7 = vrot.slane %v297_v49, 1  ;;  %v4188_v17 = vld [vmem:[#allocation40_spill] sm:$0xff]  ;;  %v220_v26 = vld [vmem:[#allocation10 + $0x78] sm:$0xff] }
  0x4f   :  { %438 = vmatpush.msrb.mxu2 %v3049_v32  ;;  %v286_v29 = vadd.f32 %v285_v56, %v284_v19  ;;  %459 = vmatpush.msrb.mxu3 %v4171_v62  ;;  %v247_v32 = vadd.f32 %v246_v21, %v245_v14  ;;  %v229_v1 = vadd.f32 %v228_v30, %v227_v22  ;;  %v4191_v21 = vld [vmem:[#allocation48_spill] sm:$0xff]  ;;  %v4192_v22 = vld [vmem:[#allocation49_spill] sm:$0xff]  ;;  %v212_v62 = vld [vmem:[#allocation10 + $0x38] sm:$0xff] }
  0x50   :  { %418 = vmatpush.msrb.mxu1 %v4170_v60  ;;  %399 = vmatpush.msrb.mxu0 %v4173_v57  ;;  %v306_v3 = vadd.f32 %v305_v43, %v304_v24  ;;  %v238_v6 = vadd.f32 %v237_v31, %v236_v23  ;;  %v279_v35 = vadd.f32 %v278_v33, %v277_v25  ;;  %v217_v25 = vld [vmem:[#allocation10 + $0x60] sm:$0xff]  ;;  %v218_v56 = vld [vmem:[#allocation10 + $0x68] sm:$0xff]  ;;  %v216_v60 = vld [vmem:[#allocation10 + $0x58] sm:$0xff] }
  0x51   :  { %439 = vmatpush.msrb.mxu2 %v4168_v28  ;;  %460 = vmatpush.msrb.mxu3 %v4175_v34  ;;  %v287_v2 = vrot.slane %v286_v29, 2  ;;  %v299_v16 = vadd.f32 %v298_v7, %v297_v49  ;;  %v206_v30 = vld [vmem:[#allocation10 + $0x8] sm:$0xff]  ;;  %v208_v43 = vld [vmem:[#allocation10 + $0x18] sm:$0xff]  ;;  %v215_v34 = vld [vmem:[#allocation10 + $0x50] sm:$0xff] }
  0x52   :  { %419 = vmatpush.msrb.mxu1 %v4174_v50  ;;  %400 = vmatpush.msrb.mxu0 %v4177_v59  ;;  %v307_v12 = vrot.slane %v306_v3, 1  ;;  %v280_v14 = vrot.slane %v279_v35, 1  ;;  %v219_v50 = vld [vmem:[#allocation10 + $0x70] sm:$0xff] }
  0x53   :  { %440 = vmatpush.msrb.mxu2 %v4172_v40  ;;  %461 = vmatpush.msrb.mxu3 %v4180_v5  ;;  %v288_v9 = vadd.f32 %v287_v2, %v286_v29  ;;  %v214_v29 = vld [vmem:[#allocation10 + $0x48] sm:$0xff]  ;;  %v2478_v7 = vld [vmem:[%s4086_s1 + $0x38] sm:$0xff] }
  0x54   :  { %365 = vmatmul.f32.vlgmr.msra.gmra.mxu2 %v247_v32  ;;  %420 = vmatpush.msrb.mxu1 %v4178_v42  ;;  %v308_v54 = vadd.f32 %v307_v12, %v306_v3  ;;  %v281_v19 = vadd.f32 %v280_v14, %v279_v35  ;;  %v205_v32 = vld [vmem:[#allocation10] sm:$0xff]  ;;  %v139_v14 = vld [vmem:[%s4089_s4] sm:$0x1] }
  0x55   :  { %441 = vmatpush.msrb.mxu2 %v4176_v47  ;;  %385 = vmatmul.f32.vlgmr.msra.gmra.mxu3 %v256_v0  ;;  %v289_v46 = vrot.slane %v288_v9, 1  ;;  %v211_v47 = vld [vmem:[#allocation10 + $0x30] sm:$0xff] }
  0x56   :  { %401 = vmatpush.msrb.mxu0 %v4181_v8  ;;  %421 = vmatpush.msrb.mxu1 %v4182_v11  ;;  %v2477_v8 = vld [vmem:[%s4086_s1 + $0x30] sm:$0xff] }
  0x57   :  { %442 = vmatpush.msrb.mxu2 %v4179_v4  ;;  %462 = vmatpush.msrb.mxu3 %v4184_v37  ;;  %v290_v24 = vadd.f32 %v289_v46, %v288_v9 }
  0x58   :  { %325 = vmatmul.f32.vlgmr.msra.gmra.mxu0 %v229_v1  ;;  %345 = vmatmul.f32.vlgmr.msra.gmra.mxu1 %v238_v6  ;;  %v207_v1 = vld [vmem:[#allocation10 + $0x10] sm:$0xff] }
  0x59   :  { %443 = vmatpush.msrb.mxu2 %v4183_v10  ;;  %402 = vmatpush.msrb.mxu0 %v4185_v13  ;;  %v2476_v10 = vld [vmem:[%s4086_s1 + $0x28] sm:$0xff]  ;;  %v2475_v13 = vld [vmem:[%s4086_s1 + $0x20] sm:$0xff] }
  0x5a   :  { %422 = vmatpush.msrb.mxu1 %v4186_v41  ;;  %463 = vmatpush.msrb.mxu3 %v4187_v15  ;;  %v2486_v15 = vld [vmem:[%s4086_s1 + $0x78] sm:$0xff] }
  0x5b   :  { %444 = vmatpush.msrb.mxu2 %v3223_v45  ;;  %403 = vmatpush.msrb.mxu0 %v4188_v17  ;;  %v2502_v17 = vld [vmem:[%s4086_s1 + $0xf8] sm:$0xff] }
  0x5c   :  { %423 = vmatpush.msrb.mxu1 %v4189_v20  ;;  %464 = vmatpush.msrb.mxu3 %v4190_v18  ;;  %v140_v20 = vld [vmem:[%s4090_s5] sm:$0x1] }
  0x5d   :  { %445 = vmatpush.msrb.mxu2 %v3307_v61  ;;  %404 = vmatpush.msrb.mxu0 %v4191_v21  ;;  %v2501_v21 = vld [vmem:[%s4086_s1 + $0xf0] sm:$0xff] }
  0x5e   :  { %446 = vmatmul.f32.vlgmr.msrb.gmra.mxu2 %v299_v16  ;;  %424 = vmatpush.msrb.mxu1 %v4192_v22  ;;  %v2484_v22 = vld [vmem:[%s4086_s1 + $0x68] sm:$0xff] }
  0x5f   :  { %465 = vmatpush.msrb.mxu3 %v3312_v55  ;;  %405 = vmatpush.msrb.mxu0 %v3335_v51  ;;  %v213_v55 = vld [vmem:[#allocation10 + $0x40] sm:$0xff] }
  0x60   :  { %466 = vmatmul.f32.vlgmr.msrb.gmra.mxu3 %v308_v54  ;;  %425 = vmatpush.msrb.mxu1 %v3340_v63  ;;  %v209_v51 = vld [vmem:[#allocation10 + $0x20] sm:$0xff]  ;;  %v210_v63 = vld [vmem:[#allocation10 + $0x28] sm:$0xff] }
  0x61   :  { %406 = vmatmul.f32.vlgmr.msrb.gmra.mxu0 %v281_v19  ;;  %426 = vmatmul.f32.vlgmr.msrb.gmra.mxu1 %v290_v24  ;;  %v2485_v19 = vld [vmem:[%s4086_s1 + $0x70] sm:$0xff]  ;;  %v2483_v24 = vld [vmem:[%s4086_s1 + $0x60] sm:$0xff] }
  0x62   :  { %503 = vmatpush.msra.mxu2 %v217_v25  ;;  %523 = vmatpush.msra.mxu1 %v218_v56 }
  0x63   :  { %563 = vmatpush.msra.mxu3 %v220_v26  ;;  %586 = vmatpush.msra.mxu0 %v217_v25  ;;  %v2493_v25 = vld [vmem:[%s4086_s1 + $0xb0] sm:$0xff] }
  0x64   :  { %504 = vmatpush.msra.mxu2 %v213_v55  ;;  %524 = vmatpush.msra.mxu1 %v214_v29 }
  0x65   :  { %564 = vmatpush.msra.mxu3 %v216_v60  ;;  %587 = vmatpush.msra.mxu0 %v213_v55  ;;  %v2498_v55 = vld [vmem:[%s4086_s1 + $0xd8] sm:$0xff] }
  0x66   :  { %505 = vmatpush.msra.mxu2 %v209_v51  ;;  %525 = vmatpush.msra.mxu1 %v210_v63 }
  0x67   :  { %565 = vmatpush.msra.mxu3 %v212_v62  ;;  %588 = vmatpush.msra.mxu0 %v209_v51  ;;  %v2491_v51 = vld [vmem:[%s4086_s1 + $0xa0] sm:$0xff] }
  0x68   :  { %506 = vmatpush.msra.mxu2 %v205_v32  ;;  %526 = vmatpush.msra.mxu1 %v206_v30 }
  0x69   :  { %566 = vmatpush.msra.mxu3 %v208_v43  ;;  %589 = vmatpush.msra.mxu0 %v205_v32  ;;  %v2479_v32 = vld [vmem:[%s4086_s1 + $0x40] sm:$0xff] }
  0x6a   :  { %606 = vmatpush.msrb.mxu1 %v218_v56  ;;  %543 = vmatpush.msrb.mxu2 %v219_v50  ;;  %v2499_v56 = vld [vmem:[%s4086_s1 + $0xe0] sm:$0xff] }
  0x6b   :  { %646 = vmatpush.msrb.mxu3 %v220_v26  ;;  %974 = vmatpush.bf16.msrb.mxu0 %v2478_v7  ;;  %v2473_v26 = vld [vmem:[%s4086_s1 + $0x10] sm:$0xff] }
  0x6c   :  { %607 = vmatpush.msrb.mxu1 %v214_v29  ;;  %544 = vmatpush.msrb.mxu2 %v215_v34  ;;  %v2472_v29 = vld [vmem:[%s4086_s1 + $0x8] sm:$0xff] }
  0x6d   :  { %647 = vmatpush.msrb.mxu3 %v216_v60  ;;  %v2480_v60 = vld [vmem:[%s4086_s1 + $0x48] sm:$0xff] }
  0x6e   :  { %608 = vmatpush.msrb.mxu1 %v210_v63  ;;  %545 = vmatpush.msrb.mxu2 %v211_v47  ;;  %v2497_v63 = vld [vmem:[%s4086_s1 + $0xd0] sm:$0xff] }
  0x6f   :  { %648 = vmatpush.msrb.mxu3 %v212_v62  ;;  %975 = vmatpush.bf16.msrb.mxu0 %v2477_v8  ;;  %v2471_v62 = vld [vmem:[%s4086_s1] sm:$0xff] }
  0x70   :  { %609 = vmatpush.msrb.mxu1 %v206_v30  ;;  %546 = vmatpush.msrb.mxu2 %v207_v1  ;;  %v2490_v30 = vld [vmem:[%s4086_s1 + $0x98] sm:$0xff] }
  0x71   :  { %649 = vmatpush.msrb.mxu3 %v208_v43  ;;  %v2496_v43 = vld [vmem:[%s4086_s1 + $0xc8] sm:$0xff] }
  0x73   :  { %976 = vmatpush.bf16.msrb.mxu0 %v2476_v10 }
  0x77   :  { %977 = vmatpush.bf16.msrb.mxu0 %v2475_v13 }
  0xd5   :  { %v326_v45 = vpop.f32.mrf.mxu0  ;;  %v346_v61 = vpop.f32.mrf.mxu1 }
  0xd6   :  { %v347_v23 = vadd.f32 %v346_v61, %v326_v45  ;;  %v2494_v45 = vld [vmem:[%s4086_s1 + $0xb8] sm:$0xff]  ;;  %v2500_v61 = vld [vmem:[%s4086_s1 + $0xe8] sm:$0xff] }
  0xd7   :  { %v366_v48 = vpop.f32.mrf.mxu2 }
  0xd8   :  { %v386_v28 = vpop.f32.mrf.mxu3  ;;  %v367_v27 = vadd.f32 %v366_v48, %v347_v23  ;;  %v2474_v23 = vld [vmem:[%s4086_s1 + $0x18] sm:$0xff] }
  0xd9   :  { %v2482_v48 = vld [vmem:[%s4086_s1 + $0x58] sm:$0xff]  ;;  %978 = vmatpush.bf16.msrb.mxu0 %v2474_v23 }
  0xda   :  { %v387_v40 = vadd.f32 %v386_v28, %v367_v27  ;;  %v2481_v28 = vld [vmem:[%s4086_s1 + $0x50] sm:$0xff]  ;;  %v2492_v27 = vld [vmem:[%s4086_s1 + $0xa8] sm:$0xff] }
  0xdc   :  { %v389_v0 = vmul.f32 0.001953125, %v387_v40  ;;  %v2489_v40 = vld [vmem:[%s4086_s1 + $0x90] sm:$0xff] }
  0xdd   :  { %979 = vmatpush.bf16.msrb.mxu0 %v2473_v26 }
  0xde   :  { %v407_v57 = vpop.f32.mrf.mxu0  ;;  %v427_v31 = vpop.f32.mrf.mxu1  ;;  %v471_v3 = vmul.f32 %v389_v0, %v389_v0 }
  0xdf   :  { %v428_v49 = vadd.f32 %v427_v31, %v407_v57  ;;  %v2495_v57 = vld [vmem:[%s4086_s1 + $0xc0] sm:$0xff]  ;;  %v2488_v31 = vld [vmem:[%s4086_s1 + $0x88] sm:$0xff] }
  0xe1   :  { %v447_v33 = vpop.f32.mrf.mxu2  ;;  %980 = vmatpush.bf16.msrb.mxu0 %v2472_v29 }
  0xe2   :  { %v448_v2 = vadd.f32 %v447_v33, %v428_v49  ;;  %v2487_v49 = vld [vmem:[%s4086_s1 + $0x80] sm:$0xff] }
  0xe3   :  { %v467_v59 = vpop.f32.mrf.mxu3 }
  0xe4   :  { %v468_v42 = vadd.f32 %v467_v59, %v448_v2 }
  0xe5   :  { %981 = vmatpush.bf16.msrb.mxu0 %v2471_v62 }
  0xe6   :  { %v470_v4 = vmul.f32 0.001953125, %v468_v42 }
  0xe8   :  { %v472_v5 = vsub.f32 %v470_v4, %v471_v3  ;;  %v4193_v4 = vld [vmem:[#allocation44_spill] sm:$0xff] }
  0xea   :  { %v473_v6 = vadd.f32 1e-05, %v472_v5 }
  0xec   :  { %2579 = vrsqrt.f32 %v473_v6  ;;  %vm480_vm1 = vweird.f32 %v473_v6 }
  0xf2   :  { %v2580_v35 = vpop.eup %2579 }
  0xf3   :  { %v475_v9 = vmul.f32 %v2580_v35, %v473_v6  ;;  %vm481_vm0 = vweird.f32 %v2580_v35 }
  0xf4   :  { %vm482_vm2 = vmor %vm480_vm1, %vm481_vm0 }
  0xf5   :  { %v476_v11 = vmul.f32 %v2580_v35, %v475_v9 }
  0xf7   :  { %v477_v37 = vmul.f32 0.5, %v476_v11 }
  0xf9   :  { %v478_v12 = vsub.f32 1.5, %v477_v37 }
  0xfb   :  { %v479_v16 = vmul.f32 %v2580_v35, %v478_v12 }
  0xfd   :  { %v483_v41 = vsel %vm482_vm2, %v2580_v35, %v479_v16 }
  0xfe   :  { %v484_v46 = vmul.f32 %v483_v41, %v139_v14 }
 0x100   :  { %2099 = vmatmul.msk.f32.vlgmr.msra.gmra.mxu2 %vm487_vm3, %v484_v46  ;;  %2100 = vmatmul.msk.f32.vlgmr.msra.gmra.mxu1 %vm487_vm3, %v484_v46  ;;  %v485_v54 = vmul.f32 %v484_v46, %v389_v0 }
 0x101   :  { %2102 = vmatmul.msk.f32.vlgmr.msra.gmra.mxu3 %vm487_vm3, %v484_v46  ;;  %626 = vmatpush.msra.mxu2 %v219_v50 }
 0x102   :  { %v486_v18 = vsub.f32 %v140_v20, %v485_v54  ;;  %993 = vmatpush.bf16.msra.mxu1 %v2486_v15  ;;  %1031 = vmatpush.bf16.msra.mxu3 %v2502_v17  ;;  %v4195_v17 = vld [vmem:[#allocation42_spill] sm:$0xff] }
 0x103   :  { %627 = vmatpush.msra.mxu2 %v215_v34 }
 0x104   :  { %2103 = vmatmul.msk.f32.vlgmr.msra.gmra.mxu0 %vm487_vm3, %v486_v18 }
 0x105   :  { %628 = vmatpush.msra.mxu2 %v211_v47 }
 0x106   :  { %994 = vmatpush.bf16.msra.mxu1 %v2485_v19  ;;  %1032 = vmatpush.bf16.msra.mxu3 %v2501_v21  ;;  %v4196_v19 = vld [vmem:[#allocation45_spill] sm:$0xff] }
 0x107   :  { %629 = vmatpush.msra.mxu2 %v207_v1 }
 0x108   :  { %2101 = vmatmul.msk.f32.vlgmr.msrb.gmra.mxu2 %vm487_vm3, %v484_v46  ;;  %2104 = vmatmul.msk.f32.vlgmr.msrb.gmra.mxu1 %vm487_vm3, %v486_v18  ;;  %v4194_v46 = vld [vmem:[#allocation39_spill] sm:$0xff] }
 0x109   :  { %2106 = vmatmul.msk.f32.vlgmr.msrb.gmra.mxu3 %vm487_vm3, %v486_v18  ;;  %1012 = vmatpush.bf16.msrb.mxu2 %v2494_v45 }
 0x10a   :  { %995 = vmatpush.bf16.msra.mxu1 %v2484_v22  ;;  %1033 = vmatpush.bf16.msra.mxu3 %v2500_v61 }
 0x10d   :  { %1013 = vmatpush.bf16.msrb.mxu2 %v2493_v25 }
 0x10e   :  { %996 = vmatpush.bf16.msra.mxu1 %v2483_v24  ;;  %1034 = vmatpush.bf16.msra.mxu3 %v2499_v56 }
 0x110   :  { %2105 = vmatmul.msk.f32.vlgmr.msra.gmra.mxu2 %vm487_vm3, %v486_v18  ;;  %vm3767_vm3 = vmand %vm1295_vm15, %vm1277_vm14 }
 0x111   :  { %1014 = vmatpush.bf16.msrb.mxu2 %v2492_v27 }
 0x112   :  { %997 = vmatpush.bf16.msra.mxu1 %v2482_v48  ;;  %1035 = vmatpush.bf16.msra.mxu3 %v2498_v55  ;;  %v4197_v55 = vld [vmem:[#allocation34_spill] sm:$0xff] }
 0x115   :  { %1015 = vmatpush.bf16.msrb.mxu2 %v2491_v51 }
 0x116   :  { %998 = vmatpush.bf16.msra.mxu1 %v2481_v28  ;;  %1036 = vmatpush.bf16.msra.mxu3 %v2497_v63 }
 0x119   :  { %1016 = vmatpush.bf16.msrb.mxu2 %v2490_v30 }
 0x11a   :  { %999 = vmatpush.bf16.msra.mxu1 %v2480_v60  ;;  %1037 = vmatpush.bf16.msra.mxu3 %v2496_v43  ;;  %v4198_v60 = vld [vmem:[#allocation35_spill] sm:$0xff] }
 0x11d   :  { %1017 = vmatpush.bf16.msrb.mxu2 %v2489_v40 }
 0x11e   :  { %1000 = vmatpush.bf16.msra.mxu1 %v2479_v32  ;;  %1038 = vmatpush.bf16.msra.mxu3 %v2495_v57 }
 0x121   :  { %1018 = vmatpush.bf16.msrb.mxu2 %v2488_v31  ;;  %v4199_v31 = vld [vmem:[#allocation43_spill] sm:$0xff] }
 0x125   :  { %1019 = vmatpush.bf16.msrb.mxu2 %v2487_v49 }
 0x17d   :  { %v528_v33 = vpop.f32.mrf.mxu1 }
 0x17e   :  { %v655_v50 = vperm.slane %v528_v33, 0 }
 0x180   :  { %v659_v59 = vmul.f32 %v655_v50, %v3257_v39  ;;  %v663_v42 = vmul.f32 %v655_v50, %v3262_v53  ;;  %v667_v23 = vmul.f32 %v655_v50, %v3282_v58  ;;  %v671_v48 = vmul.f32 %v655_v50, %v3328_v36 }
 0x181   :  { %v591_v34 = vpop.f32.mrf.mxu0 }
 0x182   :  { %v674_v3 = vperm.slane %v591_v34, 0 }
 0x183   :  { %v508_v0 = vpop.f32.mrf.mxu2 }
 0x184   :  { %v654_v2 = vperm.slane %v508_v0, 0  ;;  %v568_v47 = vpop.f32.mrf.mxu3 }
 0x185   :  { %v611_v1 = vpop.f32.mrf.mxu1  ;;  %v657_v10 = vperm.slane %v568_v47, 0 }
 0x186   :  { %v658_v5 = vmul.f32 %v654_v2, %v4193_v4  ;;  %v662_v6 = vmul.f32 %v654_v2, %v3236_v52  ;;  %v675_v7 = vperm.slane %v611_v1, 0  ;;  %v666_v21 = vmul.f32 %v654_v2, %v4196_v19  ;;  %v4200_v1 = vld [vmem:[#allocation38_spill] sm:$0xff]  ;;  %v4201_v4 = vld [vmem:[#allocation41_spill] sm:$0xff]  ;;  %v3638_v19 = vld [vmem:[%s4097_s12 + $0x20] sm:$0xff] }
 0x187   :  { %v661_v15 = vmul.f32 %v657_v10, %v4194_v46  ;;  %v665_v20 = vmul.f32 %v657_v10, %v4195_v17  ;;  %v670_v22 = vmul.f32 %v654_v2, %v3317_v44  ;;  %v669_v49 = vmul.f32 %v657_v10, %v4199_v31 }
 0x188   :  { %v679_v35 = vadd.f32 %v675_v7, %v659_v59  ;;  %v683_v8 = vadd.f32 %v675_v7, %v663_v42  ;;  %v678_v9 = vadd.f32 %v674_v3, %v658_v5  ;;  %v682_v11 = vadd.f32 %v674_v3, %v662_v6 }
 0x189   :  { %v686_v26 = vadd.f32 %v674_v3, %v666_v21  ;;  %v690_v28 = vadd.f32 %v674_v3, %v670_v22  ;;  %v687_v27 = vadd.f32 %v675_v7, %v667_v23  ;;  %v691_v62 = vadd.f32 %v675_v7, %v671_v48  ;;  %v3645_v22 = vld [vmem:[%s4097_s12 + $0x18] sm:$0xff]  ;;  %v3659_v48 = vld [vmem:[%s4097_s12 + $0x8] sm:$0xff] }
 0x18a   :  { %v695_v37 = vmax.f32 %v679_v35, 0.0  ;;  %v699_v12 = vmax.f32 %v683_v8, 0.0  ;;  %v694_v13 = vmax.f32 %v678_v9, 0.0  ;;  %v698_v16 = vmax.f32 %v682_v11, 0.0  ;;  %v3563_v11 = vld [vmem:[%s4097_s12 + $0x78] sm:$0xff] }
 0x18b   :  { %v548_v14 = vpop.f32.mrf.mxu2  ;;  %v702_v30 = vmax.f32 %v686_v26, 0.0  ;;  %v706_v43 = vmax.f32 %v690_v28, 0.0  ;;  %v703_v57 = vmax.f32 %v687_v27, 0.0  ;;  %v707_v36 = vmax.f32 %v691_v62, 0.0  ;;  %1091 = vmatpush.msra.mxu0 %v3563_v11  ;;  %1112 = vmatpush.msrb.mxu1 %v3563_v11  ;;  %v3671_v26 = vld [vmem:[%s4098_s13] sm:$0xff] }
 0x18c   :  { %v651_v39 = vpop.f32.mrf.mxu3  ;;  %v710_v41 = vpack.c.bf16 %v698_v16, %v694_v13  ;;  %v711_v53 = vpack.c.bf16 %v699_v12, %v695_v37  ;;  %v656_v24 = vperm.slane %v548_v14, 0  ;;  %v673_v33 = vmul.f32 %v657_v10, %v3276_v38  ;;  %v3568_v10 = vld [vmem:[%s4097_s12 + $0x70] sm:$0xff]  ;;  %v3575_v37 = vld [vmem:[%s4097_s12 + $0x68] sm:$0xff]  ;;  %v3584_v16 = vld [vmem:[%s4097_s12 + $0x60] sm:$0xff]  ;;  %1168 = vmatpush.msra.mxu2 %v3671_v26  ;;  %1191 = vmatpush.msrb.mxu3 %v3671_v26 }
 0x18d   :  { %v677_v54 = vperm.slane %v651_v39, 0  ;;  %v714_v2 = vpack.c.bf16 %v706_v43, %v702_v30  ;;  %v715_v47 = vpack.c.bf16 %v707_v36, %v703_v57  ;;  %1092 = vmatpush.msra.mxu0 %v3568_v10  ;;  %1113 = vmatpush.msrb.mxu1 %v3568_v10  ;;  %v3589_v14 = vld [vmem:[%s4097_s12 + $0x58] sm:$0xff]  ;;  %v3596_v39 = vld [vmem:[%s4097_s12 + $0x50] sm:$0xff] }
 0x18e   :  { %982 = vmatmul.bf16.vlgmr.msrb.gmra.mxu0 %v710_v41  ;;  %1001 = vmatmul.bf16.vlgmr.msra.gmra.mxu1 %v711_v53  ;;  %v660_v29 = vmul.f32 %v656_v24, %v4197_v55  ;;  %v664_v51 = vmul.f32 %v656_v24, %v4198_v60  ;;  %v668_v3 = vmul.f32 %v656_v24, %v4200_v1  ;;  %v3603_v41 = vld [vmem:[%s4097_s12 + $0x48] sm:$0xff] }
 0x18f   :  { %v681_v52 = vadd.f32 %v677_v54, %v661_v15  ;;  %v685_v18 = vadd.f32 %v677_v54, %v665_v20  ;;  %v689_v34 = vadd.f32 %v677_v54, %v669_v49  ;;  %v693_v0 = vadd.f32 %v677_v54, %v673_v33  ;;  %1093 = vmatpush.msra.mxu0 %v3575_v37  ;;  %v3612_v15 = vld [vmem:[%s4097_s12 + $0x40] sm:$0xff]  ;;  %v3619_v54 = vld [vmem:[%s4097_s12 + $0x38] sm:$0xff] }
 0x190   :  { %v672_v5 = vmul.f32 %v656_v24, %v4201_v4  ;;  %1114 = vmatpush.msrb.mxu1 %v3575_v37 }
 0x191   :  { %v697_v45 = vmax.f32 %v681_v52, 0.0  ;;  %v701_v61 = vmax.f32 %v685_v18, 0.0  ;;  %v705_v59 = vmax.f32 %v689_v34, 0.0  ;;  %v709_v42 = vmax.f32 %v693_v0, 0.0  ;;  %1094 = vmatpush.msra.mxu0 %v3584_v16  ;;  %v3626_v52 = vld [vmem:[%s4097_s12 + $0x30] sm:$0xff]  ;;  %v3631_v18 = vld [vmem:[%s4097_s12 + $0x28] sm:$0xff] }
 0x192   :  { %1115 = vmatpush.msrb.mxu1 %v3584_v16 }
 0x193   :  { %v631_v25 = vpop.f32.mrf.mxu2  ;;  %v713_v56 = vpack.c.bf16 %v701_v61, %v697_v45  ;;  %v717_v35 = vpack.c.bf16 %v709_v42, %v705_v59  ;;  %1095 = vmatpush.msra.mxu0 %v3589_v14  ;;  %v3652_v45 = vld [vmem:[%s4097_s12 + $0x10] sm:$0xff] }
 0x194   :  { %v676_v63 = vperm.slane %v631_v25, 0  ;;  %1116 = vmatpush.msrb.mxu1 %v3589_v14 }
 0x195   :  { %1039 = vmatmul.bf16.vlgmr.msra.gmra.mxu3 %v713_v56  ;;  %1096 = vmatpush.msra.mxu0 %v3596_v39  ;;  %v3666_v56 = vld [vmem:[%s4097_s12] sm:$0xff] }
 0x196   :  { %v680_v44 = vadd.f32 %v676_v63, %v660_v29  ;;  %v684_v32 = vadd.f32 %v676_v63, %v664_v51  ;;  %v688_v6 = vadd.f32 %v676_v63, %v668_v3  ;;  %v692_v7 = vadd.f32 %v676_v63, %v672_v5  ;;  %1117 = vmatpush.msrb.mxu1 %v3596_v39 }
 0x197   :  { %1097 = vmatpush.msra.mxu0 %v3603_v41  ;;  %1674 = vmatpush.msra.mxu3 %v3563_v11 }
 0x198   :  { %v696_v40 = vmax.f32 %v680_v44, 0.0  ;;  %v700_v58 = vmax.f32 %v684_v32, 0.0  ;;  %v704_v8 = vmax.f32 %v688_v6, 0.0  ;;  %v708_v38 = vmax.f32 %v692_v7, 0.0  ;;  %1118 = vmatpush.msrb.mxu1 %v3603_v41 }
 0x199   :  { %1098 = vmatpush.msra.mxu0 %v3612_v15  ;;  %1675 = vmatpush.msra.mxu3 %v3568_v10 }
 0x19a   :  { %v712_v50 = vpack.c.bf16 %v700_v58, %v696_v40  ;;  %v716_v9 = vpack.c.bf16 %v708_v38, %v704_v8  ;;  %1119 = vmatpush.msrb.mxu1 %v3612_v15 }
 0x19b   :  { %1099 = vmatpush.msra.mxu0 %v3619_v54  ;;  %1676 = vmatpush.msra.mxu3 %v3575_v37 }
 0x19c   :  { %1020 = vmatmul.bf16.vlgmr.msrb.gmra.mxu2 %v712_v50  ;;  %1120 = vmatpush.msrb.mxu1 %v3619_v54 }
 0x19d   :  { %1100 = vmatpush.msra.mxu0 %v3626_v52  ;;  %1677 = vmatpush.msra.mxu3 %v3584_v16 }
 0x19e   :  { %987 = vmatmul.bf16.gmra.mxu0 %v714_v2  ;;  %1006 = vmatmul.bf16.gmra.mxu1 %v715_v47 }
 0x19f   :  { %1121 = vmatpush.msrb.mxu1 %v3626_v52  ;;  %1101 = vmatpush.msra.mxu0 %v3631_v18 }
 0x1a0   :  { %1678 = vmatpush.msra.mxu3 %v3589_v14 }
 0x1a1   :  { %1122 = vmatpush.msrb.mxu1 %v3631_v18  ;;  %1102 = vmatpush.msra.mxu0 %v3638_v19 }
 0x1a2   :  { %1679 = vmatpush.msra.mxu3 %v3596_v39 }
 0x1a3   :  { %1123 = vmatpush.msrb.mxu1 %v3638_v19  ;;  %1103 = vmatpush.msra.mxu0 %v3645_v22 }
 0x1a4   :  { %1680 = vmatpush.msra.mxu3 %v3603_v41 }
 0x1a5   :  { %1044 = vmatmul.bf16.gmra.mxu3 %v717_v35  ;;  %1124 = vmatpush.msrb.mxu1 %v3645_v22 }
 0x1a6   :  { %1104 = vmatpush.msra.mxu0 %v3652_v45  ;;  %1681 = vmatpush.msra.mxu3 %v3612_v15 }
 0x1a7   :  { %1125 = vmatpush.msrb.mxu1 %v3652_v45 }
 0x1a8   :  { %1105 = vmatpush.msra.mxu0 %v3659_v48  ;;  %1682 = vmatpush.msra.mxu3 %v3619_v54 }
 0x1a9   :  { %1126 = vmatpush.msrb.mxu1 %v3659_v48 }
 0x1aa   :  { %1106 = vmatpush.msra.mxu0 %v3666_v56  ;;  %1683 = vmatpush.msra.mxu3 %v3626_v52 }
 0x1ab   :  { %1127 = vmatpush.msrb.mxu1 %v3666_v56 }
 0x1ac   :  { %1025 = vmatmul.bf16.gmra.mxu2 %v716_v9  ;;  %1684 = vmatpush.msra.mxu3 %v3631_v18 }
 0x1ae   :  { %1685 = vmatpush.msra.mxu3 %v3638_v19 }
 0x1b0   :  { %1686 = vmatpush.msra.mxu3 %v3645_v22 }
 0x1b2   :  { %1687 = vmatpush.msra.mxu3 %v3652_v45 }
 0x1b4   :  { %1688 = vmatpush.msra.mxu3 %v3659_v48 }
 0x1b6   :  { %1689 = vmatpush.msra.mxu3 %v3666_v56 }
 0x20b   :  { %v983_v12 = vpop.f32.mrf.mxu0  ;;  %v1002_v13 = vpop.f32.mrf.mxu1 }
 0x20c   :  { %v1003_v28 = vadd.f32 %v1002_v13, %v983_v12 }
 0x213   :  { %v985_v46 = vpop.f32.mrf.mxu0  ;;  %v1004_v17 = vpop.f32.mrf.mxu1 }
 0x214   :  { %v1005_v25 = vadd.f32 %v1004_v17, %v985_v46 }
 0x218   :  { %v1040_v53 = vpop.f32.mrf.mxu3 }
 0x21b   :  { %v988_v61 = vpop.f32.mrf.mxu0  ;;  %v1007_v23 = vpop.f32.mrf.mxu1 }
 0x21c   :  { %v1008_v27 = vadd.f32 %v1007_v23, %v988_v61  ;;  %v2526_v61 = vld [vmem:[#allocation2 + $0xb8] sm:$0xff] }
 0x21d   :  { %1627 = vmatpush.bf16.msrb.mxu2 %v2526_v61 }
 0x21f   :  { %v1021_v20 = vpop.f32.mrf.mxu2 }
 0x220   :  { %v1042_v21 = vpop.f32.mrf.mxu3  ;;  %v1022_v51 = vadd.f32 %v1021_v20, %v1003_v28  ;;  %v2518_v20 = vld [vmem:[#allocation2 + $0x78] sm:$0xff]  ;;  %v2517_v28 = vld [vmem:[#allocation2 + $0x70] sm:$0xff] }
 0x221   :  { %1476 = vmatpush.bf16.msrb.mxu0 %v2518_v20  ;;  %v2519_v20 = vld [vmem:[#allocation2 + $0x80] sm:$0xff] }
 0x222   :  { %v3683_v30 = vadd.f32 %v1040_v53, %v1022_v51  ;;  %v2516_v51 = vld [vmem:[#allocation2 + $0x68] sm:$0xff] }
 0x223   :  { %v990_v44 = vpop.f32.mrf.mxu0  ;;  %v1009_v32 = vpop.f32.mrf.mxu1 }
 0x224   :  { %v1010_v40 = vadd.f32 %v1009_v32, %v990_v44  ;;  %v1078_v36 = vmul.f32 %v3683_v30, %v3683_v30 }
 0x225   :  { %1477 = vmatpush.bf16.msrb.mxu0 %v2517_v28 }
 0x227   :  { %v1023_v24 = vpop.f32.mrf.mxu2 }
 0x228   :  { %v1024_v55 = vadd.f32 %v1023_v24, %v1005_v25  ;;  %v1045_v29 = vpop.f32.mrf.mxu3  ;;  %v2510_v24 = vld [vmem:[#allocation2 + $0x38] sm:$0xff] }
 0x229   :  { %1543 = vmatpush.bf16.msra.mxu1 %v2510_v24  ;;  %1478 = vmatpush.bf16.msrb.mxu0 %v2516_v51 }
 0x22a   :  { %v3680_v62 = vadd.f32 %v1042_v21, %v1024_v55  ;;  %v2525_v55 = vld [vmem:[#allocation2 + $0xb0] sm:$0xff] }
 0x22b   :  { %1628 = vmatpush.bf16.msrb.mxu2 %v2525_v55 }
 0x22c   :  { %v1079_v58 = vmul.f32 %v3680_v62, %v3680_v62  ;;  %v1069_v31 = vadd.f32 %v3680_v62, %v3683_v30 }
 0x22e   :  { %v1082_v34 = vadd.f32 %v1079_v58, %v1078_v36  ;;  %v1050_v36 = vld [vmem:[%s4091_s6] sm:$0x1]  ;;  %s2764_s6 = smov [#allocation11]  }
 0x22f   :  { %v1026_v60 = vpop.f32.mrf.mxu2  ;;  %s2082_s8 = sshll.u32 %s2764_s6, 4  ;;  %s2083_s8 = int_to_ptr.vmem [resolvable:$true] %s2082_s8 }
 0x230   :  { %v1027_v63 = vadd.f32 %v1026_v60, %v1008_v27  ;;  %v1047_v50 = vpop.f32.mrf.mxu3  ;;  %v2509_v27 = vld [vmem:[#allocation2 + $0x30] sm:$0xff] }
 0x231   :  { %1544 = vmatpush.bf16.msra.mxu1 %v2509_v27 }
 0x232   :  { %v3685_v43 = vadd.f32 %v1045_v29, %v1027_v63  ;;  %v2515_v63 = vld [vmem:[#allocation2 + $0x60] sm:$0xff] }
 0x233   :  { %1479 = vmatpush.bf16.msrb.mxu0 %v2515_v63 }
 0x234   :  { %v1080_v49 = vmul.f32 %v3685_v43, %v3685_v43  ;;  %v1070_v0 = vadd.f32 %v1069_v31, %v3685_v43 }
 0x236   :  { %v1083_v47 = vadd.f32 %v1082_v34, %v1080_v49 }
 0x237   :  { %v1028_v57 = vpop.f32.mrf.mxu2 }
 0x238   :  { %v1029_v33 = vadd.f32 %v1028_v57, %v1010_v40 }
 0x23a   :  { %v3699_v2 = vadd.f32 %v1047_v50, %v1029_v33  ;;  %v1051_v50 = vld [vmem:[#allocation5] sm:$0x1] }
 0x23c   :  { %v1071_v59 = vadd.f32 %v1070_v0, %v3699_v2  ;;  %v1081_v42 = vmul.f32 %v3699_v2, %v3699_v2 }
 0x23e   :  { %v1072_v1 = vrot.slane %v1071_v59, 4  ;;  %v1084_v3 = vadd.f32 %v1083_v47, %v1081_v42  ;;  %v2514_v47 = vld [vmem:[#allocation2 + $0x58] sm:$0xff]  ;;  %v2524_v42 = vld [vmem:[#allocation2 + $0xa8] sm:$0xff] }
 0x23f   :  { %1480 = vmatpush.bf16.msrb.mxu0 %v2514_v47  ;;  %1629 = vmatpush.bf16.msrb.mxu2 %v2524_v42 }
 0x240   :  { %v1073_v4 = vadd.f32 %v1072_v1, %v1071_v59  ;;  %v1085_v5 = vrot.slane %v1084_v3, 4  ;;  %v2508_v59 = vld [vmem:[#allocation2 + $0x28] sm:$0xff]  ;;  %v2513_v1 = vld [vmem:[#allocation2 + $0x50] sm:$0xff] }
 0x241   :  { %1545 = vmatpush.bf16.msra.mxu1 %v2508_v59 }
 0x242   :  { %v1074_v6 = vrot.slane %v1073_v4, 2  ;;  %v1086_v7 = vadd.f32 %v1085_v5, %v1084_v3  ;;  %v2507_v3 = vld [vmem:[#allocation2 + $0x20] sm:$0xff]  ;;  %v2512_v5 = vld [vmem:[#allocation2 + $0x48] sm:$0xff] }
 0x243   :  { %1481 = vmatpush.bf16.msrb.mxu0 %v2513_v1 }
 0x244   :  { %v1075_v35 = vadd.f32 %v1074_v6, %v1073_v4  ;;  %v1087_v8 = vrot.slane %v1086_v7, 2  ;;  %v2523_v4 = vld [vmem:[#allocation2 + $0xa0] sm:$0xff]  ;;  %v2506_v6 = vld [vmem:[#allocation2 + $0x18] sm:$0xff] }
 0x245   :  { %1546 = vmatpush.bf16.msra.mxu1 %v2507_v3  ;;  %1630 = vmatpush.bf16.msrb.mxu2 %v2523_v4 }
 0x246   :  { %v1076_v38 = vrot.slane %v1075_v35, 1  ;;  %v1088_v9 = vadd.f32 %v1087_v8, %v1086_v7  ;;  %v2522_v7 = vld [vmem:[#allocation2 + $0x98] sm:$0xff]  ;;  %v2505_v8 = vld [vmem:[#allocation2 + $0x10] sm:$0xff] }
 0x247   :  { %1482 = vmatpush.bf16.msrb.mxu0 %v2512_v5 }
 0x248   :  { %v1077_v12 = vadd.f32 %v1076_v38, %v1075_v35  ;;  %v1089_v13 = vrot.slane %v1088_v9, 1  ;;  %v2511_v35 = vld [vmem:[#allocation2 + $0x40] sm:$0xff]  ;;  %v1214_v38 = vlaneseq }
 0x249   :  { %1547 = vmatpush.bf16.msra.mxu1 %v2506_v6  ;;  %1631 = vmatpush.bf16.msrb.mxu2 %v2522_v7 }
 0x24a   :  { %1107 = vmatmul.f32.vlgmr.msra.gmra.mxu0 %v1077_v12  ;;  %v1090_v53 = vadd.f32 %v1089_v13, %v1088_v9  ;;  %v2521_v9 = vld [vmem:[#allocation2 + $0x90] sm:$0xff]  ;;  %v2504_v12 = vld [vmem:[#allocation2 + $0x8] sm:$0xff]  ;;  %v1215_v13 = vshrl.u32 %v1214_v38, 7 }
 0x24b   :  { %1483 = vmatpush.bf16.msrb.mxu0 %v2511_v35 }
 0x24c   :  { %1128 = vmatmul.f32.vlgmr.msrb.gmra.mxu1 %v1090_v53  ;;  %v2520_v53 = vld [vmem:[#allocation2 + $0x88] sm:$0xff] }
 0x24d   :  { %1548 = vmatpush.bf16.msra.mxu1 %v2505_v8  ;;  %1632 = vmatpush.bf16.msrb.mxu2 %v2521_v9 }
 0x24f   :  { %1695 = vmatpush.msra.mxu0 %v3563_v11 }
 0x251   :  { %1696 = vmatpush.msra.mxu0 %v3568_v10  ;;  %1549 = vmatpush.bf16.msra.mxu1 %v2504_v12 }
 0x252   :  { %1633 = vmatpush.bf16.msrb.mxu2 %v2520_v53 }
 0x253   :  { %1697 = vmatpush.msra.mxu0 %v3575_v37 }
 0x255   :  { %1698 = vmatpush.msra.mxu0 %v3584_v16 }
 0x256   :  { %1634 = vmatpush.bf16.msrb.mxu2 %v2519_v20 }
 0x257   :  { %1699 = vmatpush.msra.mxu0 %v3589_v14 }
 0x259   :  { %1700 = vmatpush.msra.mxu0 %v3596_v39  ;;  %v2763_v39 = vmov 0  }
 0x25a   :  { %v1327_v47 = vunpack.c.h.b16 %v2763_v39 }
 0x25b   :  { %1701 = vmatpush.msra.mxu0 %v3603_v41 }
 0x25d   :  { %1702 = vmatpush.msra.mxu0 %v3612_v15  ;;  %v1217_v15 = vadd.s32 16, %v1215_v13 }
 0x25f   :  { %1703 = vmatpush.msra.mxu0 %v3619_v54  ;;  %v1237_v54 = vand.u32 15, %v1217_v15 }
 0x261   :  { %1704 = vmatpush.msra.mxu0 %v3626_v52  ;;  %v1326_v52 = vunpack.c.l.b16 %v2763_v39  ;;  %vm3757_vm0 = vcmp.ge.s32.totalorder %v1237_v54, 1 }
 0x263   :  { %1705 = vmatpush.msra.mxu0 %v3631_v18 }
 0x265   :  { %1706 = vmatpush.msra.mxu0 %v3638_v19 }
 0x267   :  { %1707 = vmatpush.msra.mxu0 %v3645_v22 }
 0x269   :  { %1708 = vmatpush.msra.mxu0 %v3652_v45 }
 0x26b   :  { %1709 = vmatpush.msra.mxu0 %v3659_v48 }
 0x26d   :  { %1710 = vmatpush.msra.mxu0 %v3666_v56 }
 0x2c7   :  { %v1108_v46 = vpop.f32.mrf.mxu0 }
 0x2c8   :  { %v1111_v17 = vmul.f32 0.001953125, %v1108_v46  ;;  %v2503_v46 = vld [vmem:[#allocation2] sm:$0xff] }
 0x2c9   :  { %v1129_v21 = vpop.f32.mrf.mxu1  ;;  %1550 = vmatpush.bf16.msra.mxu1 %v2503_v46 }
 0x2ca   :  { %v1133_v23 = vmul.f32 %v1111_v17, %v1111_v17  ;;  %v1132_v25 = vmul.f32 0.001953125, %v1129_v21  ;;  %v1223_v21 = vand.u32 15, %v1215_v13 }
 0x2cc   :  { %v1134_v29 = vsub.f32 %v1132_v25, %v1133_v23  ;;  %vm3725_vm8 = vcmp.ge.s32.totalorder %v1223_v21, 1  ;;  %v1315_v25 = vsel %vm1311_vm12, 65537, %v2763_v39 }
 0x2cd   :  { %vm1310_vm9 = vmpackc.low %vm3725_vm8, %vm3725_vm8 }
 0x2ce   :  { %v1135_v60 = vadd.f32 1e-05, %v1134_v29  ;;  %v1314_v23 = vsel %vm1310_vm9, 65537, %v2763_v39  ;;  %vm1312_vm8 = vmpackc.low %vm3757_vm0, %vm3757_vm0 }
 0x2cf   :  { %v1316_v53 = vsel %vm1312_vm8, 65537, %v2763_v39 }
 0x2d0   :  { %2581 = vrsqrt.f32 %v1135_v60  ;;  %vm1142_vm5 = vweird.f32 %v1135_v60  ;;  %v1320_v56 = vunpack.c.l.b16 %v1316_v53 }
 0x2d2   :  { %v2239_v10 = vunpack.i.l.s16 %v1320_v56 }
 0x2d4   :  { %vm1335_vm15 = vcmp.ne.s32.totalorder %v2239_v10, %v1326_v52  ;;  %v2467_v10 = vld [vmem:[%s4088_s3 + $0xf8] sm:$0xf0] }
 0x2d6   :  { %v2582_v44 = vpop.eup %2581 }
 0x2d7   :  { %v1137_v32 = vmul.f32 %v2582_v44, %v1135_v60  ;;  %vm1143_vm4 = vweird.f32 %v2582_v44  ;;  %v1218_v60 = vadd.s32 24, %v1215_v13 }
 0x2d8   :  { %vm1144_vm6 = vmor %vm1142_vm5, %vm1143_vm4 }
 0x2d9   :  { %v1138_v40 = vmul.f32 %v2582_v44, %v1137_v32  ;;  %v1318_v32 = vunpack.c.l.b16 %v1314_v23 }
 0x2db   :  { %v1139_v58 = vmul.f32 0.5, %v1138_v40  ;;  %v1319_v40 = vunpack.c.l.b16 %v1315_v25 }
 0x2dd   :  { %v1140_v57 = vsub.f32 1.5, %v1139_v58 }
 0x2df   :  { %v1141_v31 = vmul.f32 %v2582_v44, %v1140_v57 }
 0x2e1   :  { %v1145_v49 = vsel %vm1144_vm6, %v2582_v44, %v1141_v31 }
 0x2e2   :  { %v1146_v33 = vmul.f32 %v1145_v49, %v1050_v36  ;;  %v1244_v36 = vand.u32 15, %v1218_v60 }
 0x2e4   :  { %v1147_v34 = vmul.f32 %v1146_v33, %v1111_v17  ;;  %2235 = vmatmul.msk.f32.vlgmr.msra.gmra.mxu2 %vm1149_vm7, %v1146_v33  ;;  %v1216_v17 = vadd.s32 8, %v1215_v13  ;;  %vm3762_vm2 = vcmp.lt.s32.totalorder %v1244_v36, 15 }
 0x2e5   :  { %vm1366_vm9 = vmpackc.low %vm3762_vm2, %vm3762_vm2 }
 0x2e6   :  { %v1148_v0 = vsub.f32 %v1051_v50, %v1147_v34  ;;  %v1230_v24 = vand.u32 15, %v1216_v17  ;;  %v2237_v34 = vunpack.i.l.s16 %v1318_v32  ;;  %v1370_v17 = vsel %vm1366_vm9, 65537, %v2763_v39 }
 0x2e7   :  { %v1374_v61 = vunpack.c.l.b16 %v1370_v17  ;;  %v2457_v17 = vld [vmem:[%s4088_s3 + $0xe0] sm:$0xf] }
 0x2e8   :  { %2236 = vmatmul.msk.f32.vlgmr.msrb.gmra.mxu3 %vm1149_vm7, %v1148_v0  ;;  %vm3734_vm10 = vcmp.lt.s32.totalorder %v1230_v24, 15  ;;  %v2238_v0 = vunpack.i.l.s16 %v1319_v40  ;;  %vm1328_vm1 = vcmp.ne.s32.totalorder %v2237_v34, %v1326_v52 }
 0x2e9   :  { %1750 = vmatpush.msrb.mxu3 %v3671_v26  ;;  %vm1364_vm13 = vmpackc.low %vm3734_vm10, %vm3734_vm10 }
 0x2ea   :  { %v1368_v29 = vsel %vm1364_vm13, 65537, %v2763_v39  ;;  %vm1329_vm4 = vcmp.ne.s32.totalorder %v2238_v0, %v1327_v47  ;;  %vm1381_vm5 = vcmp.ne.s32.totalorder %v2238_v0, %v1326_v52  ;;  %vm1348_vm13 = vcmask 1047552  }
 0x2eb   :  { %vm1330_vm10 = vmpackc.low %vm1329_vm4, %vm1328_vm1 }
 0x2ec   :  { %vm1349_vm0 = vmand %vm1348_vm13, %vm1340_vm11 }
 0x2ed   :  { %vm1337_vm2 = vmpackc.low %vm1329_vm4, %vm1335_vm15 }
 0x367   :  { %v1170_v11 = vpop.f32.mrf.mxu2 }
 0x368   :  { %v1196_v37 = vperm.slane %v1170_v11, 0 }
 0x36a   :  { %v1197_v16 = vmul.f32 %v1196_v37, %v3683_v30  ;;  %v1198_v28 = vmul.f32 %v1196_v37, %v3680_v62  ;;  %v1199_v27 = vmul.f32 %v1196_v37, %v3685_v43  ;;  %v1200_v41 = vmul.f32 %v1196_v37, %v3699_v2 }
 0x36b   :  { %v1193_v14 = vpop.f32.mrf.mxu3  ;;  %v1372_v2 = vunpack.c.l.b16 %v1368_v29  ;;  %v2244_v37 = vunpack.i.l.s16 %v1374_v61 }
 0x36c   :  { %v1201_v55 = vperm.slane %v1193_v14, 0 }
 0x36d   :  { %v2242_v18 = vunpack.i.l.s16 %v1372_v2  ;;  %vm1389_vm1 = vcmp.ne.s32.totalorder %v2244_v37, %v1327_v47 }
 0x36e   :  { %v1202_v30 = vadd.f32 %v1201_v55, %v1197_v16  ;;  %v1203_v51 = vadd.f32 %v1201_v55, %v1198_v28  ;;  %v1204_v63 = vadd.f32 %v1201_v55, %v1199_v27  ;;  %v1205_v44 = vadd.f32 %v1201_v55, %v1200_v41 }
 0x36f   :  { %vm1382_vm6 = vcmp.ne.s32.totalorder %v2242_v18, %v1327_v47 }
 0x370   :  { %v1206_v62 = vmax.f32 %v1202_v30, 0.0  ;;  %v1207_v58 = vmax.f32 %v1203_v51, 0.0  ;;  %v1208_v43 = vmax.f32 %v1204_v63, 0.0  ;;  %v1209_v57 = vmax.f32 %v1205_v44, 0.0  ;;  %vm1383_vm12 = vmpackc.low %vm1382_vm6, %vm1381_vm5 }
 0x372   :  { %v1210_v31 = vpack.c.bf16 %v1206_v62, %v1206_v62  ;;  %v1211_v49 = vpack.c.bf16 %v1207_v58, %v1207_v58  ;;  %v1212_v33 = vpack.c.bf16 %v1208_v43, %v1208_v43  ;;  %v1213_v50 = vpack.c.bf16 %v1209_v57, %v1209_v57 }
 0x374   :  { %v1273_v59 = vunpack.c.l.b16 %v1212_v33  ;;  %v1274_v42 = vunpack.c.l.b16 %v1213_v50  ;;  %v1271_v1 = vunpack.c.l.b16 %v1210_v31  ;;  %v1272_v3 = vunpack.c.l.b16 %v1211_v49 }
 0x376   :  { %v1276_v4 = vpack.c.b16 %v1274_v42, %v1273_v59  ;;  %v1275_v5 = vpack.c.b16 %v1272_v3, %v1271_v1 }
 0x378   :  { %1484 = vmatmul.bf16.vlgmr.msrb.gmra.mxu0 %v1275_v5  ;;  %v1279_v7 = vshrl.u32 %v1275_v5, 16  ;;  %v1282_v35 = vshll.u32 %v1275_v5, 16  ;;  %v1289_v8 = vshll.u32 %v1276_v4, 16  ;;  %v1286_v24 = vshrl.u32 %v1276_v4, 16 }
 0x37a   :  { %v1281_v45 = vrot.slane %v1279_v7, 7  ;;  %v1341_v38 = vrot.slane %v1282_v35, 1  ;;  %v1343_v13 = vrot.slane %v1289_v8, 1  ;;  %v1288_v11 = vrot.slane %v1286_v24, 7 }
 0x37c   :  { %v1284_v9 = vor.u32 %v1282_v35, %v1281_v45  ;;  %v1342_v12 = vor.u32 %v1341_v38, %v1279_v7  ;;  %v1291_v16 = vor.u32 %v1289_v8, %v1288_v11  ;;  %v1345_v14 = vor.u32 %v1343_v13, %v1286_v24  ;;  %v2459_v24 = vld [vmem:[%s4088_s3 + $0xf0] sm:$0xf0]  ;;  %v2556_v11 = vld [vmem:[%s4088_s3 + $0xec] sm:$0xf] }
 0x37d   :  { %v3834_v37 = vor.u32 %v2556_v11, %v2467_v10  ;;  %v2542_v11 = vld [vmem:[%s4088_s3 + $0x74] sm:$0xf0] }
 0x37e   :  { %v1297_v48 = vsel %vm3767_vm3, 0, %v1284_v9  ;;  %v1344_v46 = vsel %vm1340_vm11, %v1342_v12, %v1343_v13  ;;  %v1292_v39 = vsel %vm1277_vm14, %v1281_v45, %v1291_v16  ;;  %v1350_v23 = vsel %vm1349_vm0, %v1345_v14, 0  ;;  %vm1390_vm3 = vmpackc.low %vm1389_vm1, %vm1381_vm5  ;;  %v2441_v16 = vld [vmem:[%s4088_s3 + $0xc0] sm:$0xf]  ;;  %v2553_v14 = vld [vmem:[%s4088_s3 + $0xcc] sm:$0xf0] }
 0x37f   :  { %v1338_v20 = vsel %vm1330_vm10, %v1297_v48, 0  ;;  %v1391_v21 = vsel %vm1383_vm12, %v1344_v46, 0  ;;  %v1339_v25 = vsel %vm1337_vm2, %v1292_v39, 0  ;;  %v1392_v28 = vsel %vm1390_vm3, %v1350_v23, 0  ;;  %v2551_v39 = vld [vmem:[%s4088_s3 + $0xc4] sm:$0xf]  ;;  %2043 = vmatpush.bf16.msrb.mxu0 %v3834_v37 }
 0x380   :  { %1551 = vmatmul.bf16.vlgmr.msra.gmra.mxu1 %v1338_v20  ;;  %1635 = vmatmul.bf16.vlgmr.msrb.gmra.mxu2 %v1391_v21  ;;  %v2557_v20 = vld [vmem:[%s4088_s3 + $0xec] sm:$0xf0]  ;;  %v2442_v23 = vor.u32 %v2553_v14, %v2441_v16  ;;  %v2540_v14 = vld [vmem:[%s4088_s3 + $0x6c] sm:$0xf] }
 0x381   :  { %v2458_v21 = vor.u32 %v2557_v20, %v2457_v17  ;;  %v2393_v20 = vld [vmem:[%s4088_s3 + $0x60] sm:$0xf] }
 0x383   :  { %1986 = vmatpush.bf16.msrb.mxu1 %v2458_v21  ;;  %v2539_v21 = vld [vmem:[%s4088_s3 + $0x64] sm:$0xf] }
 0x387   :  { %1987 = vmatpush.bf16.msrb.mxu1 %v2442_v23  ;;  %v2377_v23 = vld [vmem:[%s4088_s3 + $0x40] sm:$0xf] }
 0x388   :  { %1489 = vmatmul.bf16.gmra.mxu0 %v1276_v4 }
 0x390   :  { %1556 = vmatmul.bf16.gmra.mxu1 %v1339_v25  ;;  %1640 = vmatmul.bf16.gmra.mxu2 %v1392_v28  ;;  %v2443_v25 = vld [vmem:[%s4088_s3 + $0xd0] sm:$0xf0] }
 0x391   :  { %v2446_v28 = vor.u32 %v2551_v39, %v2443_v25  ;;  %v2403_v39 = vld [vmem:[%s4088_s3 + $0x78] sm:$0xf0] }
 0x392   :  { %v2406_v25 = vor.u32 %v2540_v14, %v2403_v39  ;;  %v2587_v14 = vld [vmem:[%s4085_s0 + $0x8] sm:$0xff] }
 0x3f5   :  { %v1485_v27 = vpop.f32.mrf.mxu0 }
 0x3fd   :  { %v1552_v41 = vpop.f32.mrf.mxu1  ;;  %v1487_v29 = vpop.f32.mrf.mxu0 }
 0x3fe   :  { %v1553_v32 = vadd.f32 %v1552_v41, %v1485_v27  ;;  %v2552_v27 = vld [vmem:[%s4088_s3 + $0xcc] sm:$0xf]  ;;  %v2451_v41 = vld [vmem:[%s4088_s3 + $0xd8] sm:$0xf0] }
 0x403   :  { %v1636_v55 = vpop.f32.mrf.mxu2 }
 0x404   :  { %v3793_v58 = vadd.f32 %v1636_v55, %v1553_v32  ;;  %v2425_v55 = vld [vmem:[%s4088_s3 + $0xa0] sm:$0xf]  ;;  %v2435_v32 = vld [vmem:[%s4088_s3 + $0xb8] sm:$0xf0] }
 0x405   :  { %v1554_v15 = vpop.f32.mrf.mxu1  ;;  %v1490_v51 = vpop.f32.mrf.mxu0 }
 0x406   :  { %v1555_v63 = vadd.f32 %v1554_v15, %v1487_v29  ;;  %v1661_v36 = vmul.f32 %v3793_v58, %v3793_v58  ;;  %v3858_v29 = vor.u32 %v2552_v27, %v2451_v41  ;;  %v2549_v15 = vld [vmem:[%s4088_s3 + $0xac] sm:$0xf0]  ;;  %v2535_v27 = vld [vmem:[%s4088_s3 + $0x44] sm:$0xf]  ;;  %v2379_v41 = vld [vmem:[%s4088_s3 + $0x50] sm:$0xf0] }
 0x408   :  { %2044 = vmatpush.bf16.msrb.mxu0 %v3858_v29 }
 0x40b   :  { %v1638_v60 = vpop.f32.mrf.mxu2 }
 0x40c   :  { %v3791_v40 = vadd.f32 %v1638_v60, %v1555_v63  ;;  %v2547_v60 = vld [vmem:[%s4088_s3 + $0xa4] sm:$0xf]  ;;  %v2548_v63 = vld [vmem:[%s4088_s3 + $0xac] sm:$0xf] }
 0x40d   :  { %v1557_v30 = vpop.f32.mrf.mxu1  ;;  %v1492_v54 = vpop.f32.mrf.mxu0 }
 0x40e   :  { %v1558_v62 = vadd.f32 %v1557_v30, %v1490_v51  ;;  %v1662_v2 = vmul.f32 %v3791_v40, %v3791_v40  ;;  %v1652_v31 = vadd.f32 %v3791_v40, %v3793_v58  ;;  %v2427_v30 = vld [vmem:[%s4088_s3 + $0xb0] sm:$0xf0]  ;;  %v2426_v51 = vor.u32 %v2549_v15, %v2425_v55 }
 0x40f   :  { %v2382_v15 = vor.u32 %v2535_v27, %v2379_v41  ;;  %v2589_v41 = vld [vmem:[%s4085_s0 + $0x20] sm:$0xff] }
 0x410   :  { %v1665_v34 = vadd.f32 %v1662_v2, %v1661_v36  ;;  %v3882_v2 = vor.u32 %v2548_v63, %v2435_v32  ;;  %v2411_v36 = vld [vmem:[%s4088_s3 + $0x90] sm:$0xf0]  ;;  %1988 = vmatpush.bf16.msrb.mxu1 %v2426_v51  ;;  %v2536_v51 = vld [vmem:[%s4088_s3 + $0x4c] sm:$0xf] }
 0x412   :  { %2045 = vmatpush.bf16.msrb.mxu0 %v3882_v2 }
 0x413   :  { %v1641_v44 = vpop.f32.mrf.mxu2 }
 0x414   :  { %v3795_v43 = vadd.f32 %v1641_v44, %v1558_v62  ;;  %v2430_v44 = vor.u32 %v2547_v60, %v2427_v30  ;;  %v2409_v62 = vld [vmem:[%s4088_s3 + $0x80] sm:$0xf]  ;;  %v2385_v60 = vld [vmem:[%s4088_s3 + $0x48] sm:$0xf]  ;;  %v2538_v30 = vld [vmem:[%s4088_s3 + $0x54] sm:$0xf0] }
 0x415   :  { %v1559_v57 = vpop.f32.mrf.mxu1  ;;  %v2386_v63 = vor.u32 %v2538_v30, %v2385_v60  ;;  %v2590_v60 = vld [vmem:[%s4085_s0 + $0x38] sm:$0xff] }
 0x416   :  { %v1663_v49 = vmul.f32 %v3795_v43, %v3795_v43  ;;  %v1560_v33 = vadd.f32 %v1559_v57, %v1492_v54  ;;  %v1653_v0 = vadd.f32 %v1652_v31, %v3795_v43  ;;  %v2545_v57 = vld [vmem:[%s4088_s3 + $0x8c] sm:$0xf0]  ;;  %v2543_v54 = vld [vmem:[%s4088_s3 + $0x84] sm:$0xf] }
 0x418   :  { %v1666_v47 = vadd.f32 %v1665_v34, %v1663_v49  ;;  %v2544_v49 = vld [vmem:[%s4088_s3 + $0x8c] sm:$0xf]  ;;  %v2410_v34 = vor.u32 %v2545_v57, %v2409_v62  ;;  %v2361_v62 = vld [vmem:[%s4088_s3 + $0x20] sm:$0xf]  ;;  %v2533_v57 = vld [vmem:[%s4088_s3 + $0x2c] sm:$0xf0] }
 0x41a   :  { %1989 = vmatpush.bf16.msrb.mxu1 %v2410_v34 }
 0x41b   :  { %v1643_v50 = vpop.f32.mrf.mxu2 }
 0x41c   :  { %v3806_v52 = vadd.f32 %v1643_v50, %v1560_v33  ;;  %v2419_v33 = vld [vmem:[%s4088_s3 + $0x98] sm:$0xf0] }
 0x41e   :  { %v1654_v59 = vadd.f32 %v1653_v0, %v3806_v52  ;;  %v1664_v42 = vmul.f32 %v3806_v52, %v3806_v52  ;;  %v2414_v0 = vor.u32 %v2543_v54, %v2411_v36  ;;  %v2531_v54 = vld [vmem:[%s4088_s3 + $0x24] sm:$0xf]  ;;  %v2362_v36 = vor.u32 %v2533_v57, %v2361_v62  ;;  %v2592_v62 = vld [vmem:[%s4085_s0 + $0x30] sm:$0xff] }
 0x420   :  { %v1655_v1 = vrot.slane %v1654_v59, 4  ;;  %v1667_v3 = vadd.f32 %v1666_v47, %v1664_v42 }
 0x422   :  { %v1656_v18 = vadd.f32 %v1655_v1, %v1654_v59  ;;  %v1668_v4 = vrot.slane %v1667_v3, 4  ;;  %v3897_v59 = vor.u32 %v2544_v49, %v2419_v33  ;;  %v2369_v49 = vld [vmem:[%s4088_s3 + $0x28] sm:$0xf]  ;;  %v2534_v33 = vld [vmem:[%s4088_s3 + $0x34] sm:$0xf0] }
 0x423   :  { %v2370_v34 = vor.u32 %v2534_v33, %v2369_v49  ;;  %v2594_v33 = vld [vmem:[%s4085_s0 + $0x48] sm:$0xff] }
 0x424   :  { %v1657_v5 = vrot.slane %v1656_v18, 2  ;;  %v1669_v6 = vadd.f32 %v1668_v4, %v1667_v3  ;;  %2046 = vmatpush.bf16.msrb.mxu0 %v3897_v59  ;;  %v2465_v3 = vld [vmem:[%s4088_s3 + $0xe8] sm:$0xf]  ;;  %v1650_v4 = vld [vmem:[#allocation7] sm:$0x1] }
 0x426   :  { %v1658_v19 = vadd.f32 %v1657_v5, %v1656_v18  ;;  %v1670_v7 = vrot.slane %v1669_v6, 2  ;;  %v2558_v18 = vld [vmem:[%s4088_s3 + $0xf4] sm:$0xf0] }
 0x428   :  { %v1659_v35 = vrot.slane %v1658_v19, 1  ;;  %v1671_v22 = vadd.f32 %v1670_v7, %v1669_v6  ;;  %2047 = vmatpush.bf16.msrb.mxu0 %v2406_v25 }
 0x42a   :  { %v1660_v8 = vadd.f32 %v1659_v35, %v1658_v19  ;;  %v1672_v45 = vrot.slane %v1671_v22, 1  ;;  %v2466_v19 = vor.u32 %v2558_v18, %v2465_v3  ;;  %v2449_v35 = vld [vmem:[%s4088_s3 + $0xc8] sm:$0xf]  ;;  %v2529_v3 = vld [vmem:[%s4088_s3 + $0xc] sm:$0xf0] }
 0x42b   :  { %v2527_v18 = vld [vmem:[%s4088_s3 + $0x4] sm:$0xf] }
 0x42c   :  { %1690 = vmatmul.f32.vlgmr.msra.gmra.mxu3 %v1660_v8  ;;  %v1673_v38 = vadd.f32 %v1672_v45, %v1671_v22  ;;  %v2554_v22 = vld [vmem:[%s4088_s3 + $0xd4] sm:$0xf0] }
 0x42d   :  { %1773 = vmatpush.msra.mxu3 %v3671_v26  ;;  %v2555_v26 = vld [vmem:[%s4088_s3 + $0xe4] sm:$0xf]  ;;  %v2450_v8 = vor.u32 %v2554_v22, %v2449_v35  ;;  %v2528_v35 = vld [vmem:[%s4088_s3 + $0xc] sm:$0xf] }
 0x42e   :  { %1711 = vmatmul.f32.vlgmr.msra.gmra.mxu0 %v1673_v38  ;;  %v2462_v61 = vor.u32 %v2555_v26, %v2459_v24  ;;  %v2433_v38 = vld [vmem:[%s4088_s3 + $0xa8] sm:$0xf]  ;;  %v2541_v26 = vld [vmem:[%s4088_s3 + $0x6c] sm:$0xf0] }
 0x42f   :  { %v2394_v24 = vor.u32 %v2541_v26, %v2393_v20 }
 0x430   :  { %2005 = vmatpush.bf16.msra.mxu2 %v2462_v61  ;;  %v2401_v61 = vld [vmem:[%s4088_s3 + $0x68] sm:$0xf] }
 0x431   :  { %v2402_v16 = vor.u32 %v2542_v11, %v2401_v61  ;;  %1990 = vmatpush.bf16.msrb.mxu1 %v2394_v24  ;;  %v2585_v61 = vld [vmem:[%s4085_s0] sm:$0xff] }
 0x434   :  { %2006 = vmatpush.bf16.msra.mxu2 %v2446_v28  ;;  %v2537_v28 = vld [vmem:[%s4088_s3 + $0x4c] sm:$0xf0] }
 0x435   :  { %v2378_v55 = vor.u32 %v2537_v28, %v2377_v23 }
 0x437   :  { %1991 = vmatpush.bf16.msrb.mxu1 %v2378_v55 }
 0x438   :  { %2007 = vmatpush.bf16.msra.mxu2 %v2430_v44  ;;  %v2387_v44 = vld [vmem:[%s4088_s3 + $0x58] sm:$0xf0] }
 0x439   :  { %v2390_v32 = vor.u32 %v2536_v51, %v2387_v44 }
 0x43b   :  { %2048 = vmatpush.bf16.msrb.mxu0 %v2390_v32  ;;  %1992 = vmatpush.bf16.msrb.mxu1 %v2362_v36  ;;  %v2593_v36 = vld [vmem:[%s4085_s0 + $0x40] sm:$0xff] }
 0x43c   :  { %2008 = vmatpush.bf16.msra.mxu2 %v2414_v0  ;;  %v2532_v0 = vld [vmem:[%s4088_s3 + $0x2c] sm:$0xf] }
 0x4ab   :  { %v1712_v9 = vpop.f32.mrf.mxu0 }
 0x4ac   :  { %v1715_v53 = vmul.f32 0.001953125, %v1712_v9  ;;  %v2550_v9 = vld [vmem:[%s4088_s3 + $0xb4] sm:$0xf0] }
 0x4af   :  { %v1691_v12 = vpop.f32.mrf.mxu3 }
 0x4b0   :  { %v3812_v13 = vmul.f32 0.001953125, %v1691_v12  ;;  %v1651_v12 = vld [vmem:[#allocation8] sm:$0x1] }
 0x4b2   :  { %v1716_v48 = vmul.f32 %v3812_v13, %v3812_v13 }
 0x4b4   :  { %v1717_v46 = vsub.f32 %v1715_v53, %v1716_v48  ;;  %v2434_v53 = vor.u32 %v2550_v9, %v2433_v38 }
 0x4b6   :  { %v1718_v56 = vadd.f32 1e-05, %v1717_v46  ;;  %v2417_v46 = vld [vmem:[%s4088_s3 + $0x88] sm:$0xf] }
 0x4b8   :  { %2583 = vrsqrt.f32 %v1718_v56  ;;  %vm1725_vm4 = vweird.f32 %v1718_v56 }
 0x4be   :  { %v2584_v31 = vpop.eup %2583 }
 0x4bf   :  { %v1720_v50 = vmul.f32 %v2584_v31, %v1718_v56  ;;  %vm1726_vm14 = vweird.f32 %v2584_v31  ;;  %v2395_v56 = vld [vmem:[%s4088_s3 + $0x70] sm:$0xf0] }
 0x4c0   :  { %vm1727_vm5 = vmor %vm1725_vm4, %vm1726_vm14  ;;  %v2398_v10 = vor.u32 %v2539_v21, %v2395_v56 }
 0x4c1   :  { %v1721_v47 = vmul.f32 %v2584_v31, %v1720_v50 }
 0x4c2   :  { %2009 = vmatpush.bf16.msra.mxu2 %v2398_v10 }
 0x4c3   :  { %v1722_v42 = vmul.f32 0.5, %v1721_v47  ;;  %v2371_v47 = vld [vmem:[%s4088_s3 + $0x38] sm:$0xf0] }
 0x4c5   :  { %v1723_v1 = vsub.f32 1.5, %v1722_v42  ;;  %v2345_v42 = vld [vmem:[%s4088_s3] sm:$0xf] }
 0x4c6   :  { %2010 = vmatpush.bf16.msra.mxu2 %v2382_v15 }
 0x4c7   :  { %v1724_v5 = vmul.f32 %v2584_v31, %v1723_v1  ;;  %v2374_v1 = vor.u32 %v2532_v0, %v2371_v47  ;;  %v2595_v0 = vld [vmem:[%s4085_s0 + $0x50] sm:$0xff] }
 0x4c9   :  { %v1728_v6 = vsel %vm1727_vm5, %v2584_v31, %v1724_v5  ;;  %v2363_v31 = vld [vmem:[%s4088_s3 + $0x30] sm:$0xf0]  ;;  %v2346_v5 = vor.u32 %v2529_v3, %v2345_v42  ;;  %2049 = vmatpush.bf16.msrb.mxu0 %v2374_v1 }
 0x4ca   :  { %v1729_v7 = vmul.f32 %v1728_v6, %v1650_v4  ;;  %v2366_v50 = vor.u32 %v2531_v54, %v2363_v31  ;;  %v2347_v4 = vld [vmem:[%s4088_s3 + $0x10] sm:$0xf0] }
 0x4cb   :  { %v2350_v6 = vor.u32 %v2527_v18, %v2347_v4  ;;  %1993 = vmatpush.bf16.msrb.mxu1 %v2346_v5  ;;  %v2597_v4 = vld [vmem:[%s4085_s0 + $0x68] sm:$0xff] }
 0x4cc   :  { %2341 = vmatmul.msk.f32.vlgmr.msrb.gmra.mxu3 %vm1149_vm7, %v1729_v7  ;;  %v1730_v45 = vmul.f32 %v1729_v7, %v3812_v13  ;;  %v2546_v13 = vld [vmem:[%s4088_s3 + $0x94] sm:$0xf0]  ;;  %2011 = vmatpush.bf16.msra.mxu2 %v2366_v50 }
 0x4cd   :  { %2024 = vmatpush.bf16.msrb.mxu3 %v2466_v19  ;;  %v2418_v17 = vor.u32 %v2546_v13, %v2417_v46  ;;  %v2353_v19 = vld [vmem:[%s4088_s3 + $0x8] sm:$0xf]  ;;  %v2530_v7 = vld [vmem:[%s4088_s3 + $0x14] sm:$0xf0] }
 0x4ce   :  { %v1731_v48 = vsub.f32 %v1651_v12, %v1730_v45  ;;  %v2354_v22 = vor.u32 %v2530_v7, %v2353_v19  ;;  %v2598_v19 = vld [vmem:[%s4085_s0 + $0x70] sm:$0xff] }
 0x4cf   :  { %2559 = vmatpush.bf16.msra.mxu1 %v3834_v37 }
 0x4d0   :  { %2012 = vmatpush.bf16.msra.mxu2 %v2350_v6 }
 0x4d1   :  { %2025 = vmatpush.bf16.msrb.mxu3 %v2450_v8  ;;  %v2355_v8 = vld [vmem:[%s4088_s3 + $0x18] sm:$0xf0] }
 0x4d2   :  { %v2358_v45 = vor.u32 %v2528_v35, %v2355_v8 }
 0x4d3   :  { %2560 = vmatpush.bf16.msra.mxu1 %v3858_v29 }
 0x4d4   :  { %2342 = vmatmul.msk.f32.vlgmr.msra.gmra.mxu3 %vm1149_vm7, %v1731_v48  ;;  %2050 = vmatpush.bf16.msrb.mxu0 %v2358_v45 }
 0x4d5   :  { %2026 = vmatpush.bf16.msrb.mxu3 %v2434_v53 }
 0x4d7   :  { %2561 = vmatpush.bf16.msra.mxu1 %v3882_v2 }
 0x4d9   :  { %2027 = vmatpush.bf16.msrb.mxu3 %v2418_v17 }
 0x4db   :  { %2562 = vmatpush.bf16.msra.mxu1 %v3897_v59 }
 0x4dd   :  { %2028 = vmatpush.bf16.msrb.mxu3 %v2402_v16 }
 0x4df   :  { %2563 = vmatpush.bf16.msra.mxu1 %v2406_v25  ;;  %v2588_v25 = vld [vmem:[%s4085_s0 + $0x10] sm:$0xff] }
 0x4e1   :  { %2029 = vmatpush.bf16.msrb.mxu3 %v2386_v63  ;;  %v2591_v63 = vld [vmem:[%s4085_s0 + $0x28] sm:$0xff] }
 0x4e3   :  { %2564 = vmatpush.bf16.msra.mxu1 %v2390_v32 }
 0x4e5   :  { %2030 = vmatpush.bf16.msrb.mxu3 %v2370_v34 }
 0x4e7   :  { %2565 = vmatpush.bf16.msra.mxu1 %v2374_v1  ;;  %v2596_v1 = vld [vmem:[%s4085_s0 + $0x60] sm:$0xff] }
 0x4e9   :  { %2031 = vmatpush.bf16.msrb.mxu3 %v2354_v22  ;;  %v2599_v22 = vld [vmem:[%s4085_s0 + $0x58] sm:$0xff] }
 0x4eb   :  { %2566 = vmatpush.bf16.msra.mxu1 %v2358_v45 }
 0x54f   :  { %v1752_v38 = vpop.f32.mrf.mxu3 }
 0x550   :  { %v1778_v9 = vperm.slane %v1752_v38, 0  ;;  %v2600_v38 = vld [vmem:[%s4085_s0 + $0x78] sm:$0xff] }
 0x552   :  { %v1779_v53 = vmul.f32 %v1778_v9, %v3793_v58  ;;  %v1780_v48 = vmul.f32 %v1778_v9, %v3791_v40  ;;  %v1781_v2 = vmul.f32 %v1778_v9, %v3795_v43  ;;  %v1782_v59 = vmul.f32 %v1778_v9, %v3806_v52  ;;  %v2586_v43 = vld [vmem:[%s4085_s0 + $0x18] sm:$0xff] }
 0x557   :  { %v1775_v12 = vpop.f32.mrf.mxu3 }
 0x558   :  { %v1783_v46 = vperm.slane %v1775_v12, 0 }
 0x55a   :  { %v1784_v13 = vadd.f32 %v1783_v46, %v1779_v53  ;;  %v1785_v17 = vadd.f32 %v1783_v46, %v1780_v48  ;;  %v1786_v58 = vadd.f32 %v1783_v46, %v1781_v2  ;;  %v1787_v26 = vadd.f32 %v1783_v46, %v1782_v59 }
 0x55c   :  { %v1788_v20 = vmax.f32 %v1784_v13, 0.0  ;;  %v1789_v37 = vmax.f32 %v1785_v17, 0.0  ;;  %v1790_v40 = vmax.f32 %v1786_v58, 0.0  ;;  %v1791_v21 = vmax.f32 %v1787_v26, 0.0 }
 0x55e   :  { %v1792_v29 = vpack.c.bf16 %v1789_v37, %v1788_v20  ;;  %v1793_v24 = vpack.c.bf16 %v1791_v21, %v1790_v40 }
 0x560   :  { %1994 = vmatmul.bf16.vlgmr.msrb.gmra.mxu1 %v1792_v29  ;;  %2013 = vmatmul.bf16.vlgmr.msra.gmra.mxu2 %v1792_v29 }
 0x561   :  { %2032 = vmatmul.bf16.vlgmr.msrb.gmra.mxu3 %v1792_v29  ;;  %2051 = vmatmul.bf16.vlgmr.msrb.gmra.mxu0 %v1792_v29 }
 0x570   :  { %1999 = vmatmul.bf16.gmra.mxu1 %v1793_v24  ;;  %2018 = vmatmul.bf16.gmra.mxu2 %v1793_v24 }
 0x571   :  { %2037 = vmatmul.bf16.gmra.mxu3 %v1793_v24 }
 0x580   :  { %2056 = vmatmul.bf16.vlgmr.msra.gmra.mxu1 %v1793_v24 }
 0x5dd   :  { %v1995_v56 = vpop.f32.mrf.mxu1 }
 0x5de   :  { %v1996_v11 = vadd.f32 %v2585_v61, %v1995_v56  ;;  %v2052_v10 = vpop.f32.mrf.mxu0 }
 0x5df   :  { %v2053_v52 = vadd.f32 %v2586_v43, %v2052_v10 }
 0x5e0   :  { %2062 = vst [vmem:[#allocation11] sm:$0xff] %v1996_v11 }
 0x5e1   :  { %2065 = vst [vmem:[#allocation11 + $0x18] sm:$0xff] %v2053_v52 }
 0x5e3   :  { %v2014_v16 = vpop.f32.mrf.mxu2 }
 0x5e4   :  { %v2015_v39 = vadd.f32 %v2587_v14, %v2014_v16  ;;  %v2033_v23 = vpop.f32.mrf.mxu3 }
 0x5e5   :  { %v2034_v28 = vadd.f32 %v2588_v25, %v2033_v23  ;;  %v1997_v27 = vpop.f32.mrf.mxu1 }
 0x5e6   :  { %2063 = vst [vmem:[#allocation11 + $0x8] sm:$0xff] %v2015_v39  ;;  %v1998_v55 = vadd.f32 %v2589_v41, %v1997_v27  ;;  %v2054_v15 = vpop.f32.mrf.mxu0 }
 0x5e7   :  { %2064 = vst [vmem:[#allocation11 + $0x10] sm:$0xff] %v2034_v28  ;;  %v2055_v30 = vadd.f32 %v2590_v60, %v2054_v15 }
 0x5e8   :  { %2066 = vst [vmem:[#allocation11 + $0x20] sm:$0xff] %v1998_v55 }
 0x5e9   :  { %2069 = vst [vmem:[#allocation11 + $0x38] sm:$0xff] %v2055_v30 }
 0x5eb   :  { %v2016_v51 = vpop.f32.mrf.mxu2 }
 0x5ec   :  { %v2017_v44 = vadd.f32 %v2591_v63, %v2016_v51  ;;  %v2035_v32 = vpop.f32.mrf.mxu3 }
 0x5ed   :  { %v2036_v57 = vadd.f32 %v2592_v62, %v2035_v32  ;;  %v2000_v54 = vpop.f32.mrf.mxu1 }
 0x5ee   :  { %2067 = vst [vmem:[#allocation11 + $0x28] sm:$0xff] %v2017_v44  ;;  %v2001_v31 = vadd.f32 %v2593_v36, %v2000_v54 }
 0x5ef   :  { %2068 = vst [vmem:[#allocation11 + $0x30] sm:$0xff] %v2036_v57 }
 0x5f0   :  { %2070 = vst [vmem:[#allocation11 + $0x40] sm:$0xff] %v2001_v31 }
 0x5f3   :  { %v2019_v49 = vpop.f32.mrf.mxu2 }
 0x5f4   :  { %v2020_v50 = vadd.f32 %v2594_v33, %v2019_v49  ;;  %v2038_v34 = vpop.f32.mrf.mxu3 }
 0x5f5   :  { %v2039_v47 = vadd.f32 %v2595_v0, %v2038_v34  ;;  %v2002_v42 = vpop.f32.mrf.mxu1 }
 0x5f6   :  { %2071 = vst [vmem:[#allocation11 + $0x48] sm:$0xff] %v2020_v50  ;;  %v2003_v3 = vadd.f32 %v2596_v1, %v2002_v42 }
 0x5f7   :  { %2072 = vst [vmem:[#allocation11 + $0x50] sm:$0xff] %v2039_v47 }
 0x5f8   :  { %2074 = vst [vmem:[#allocation11 + $0x60] sm:$0xff] %v2003_v3 }
 0x5fb   :  { %v2021_v18 = vpop.f32.mrf.mxu2 }
 0x5fc   :  { %v2022_v5 = vadd.f32 %v2597_v4, %v2021_v18  ;;  %v2040_v6 = vpop.f32.mrf.mxu3 }
 0x5fd   :  { %v2041_v7 = vadd.f32 %v2598_v19, %v2040_v6  ;;  %v2057_v35 = vpop.f32.mrf.mxu1 }
 0x5fe   :  { %2075 = vst [vmem:[#allocation11 + $0x68] sm:$0xff] %v2022_v5  ;;  %v2058_v8 = vadd.f32 %v2599_v22, %v2057_v35 }
 0x5ff   :  { %2076 = vst [vmem:[#allocation11 + $0x70] sm:$0xff] %v2041_v7 }
 0x600   :  { %2073 = vst [vmem:[#allocation11 + $0x58] sm:$0xff] %v2058_v8 }
 0x605   :  { %v2059_v45 = vpop.f32.mrf.mxu1 }
 0x606   :  { %v2060_v9 = vadd.f32 %v2600_v38, %v2059_v45 }
 0x608   :  { %2077 = vst [vmem:[#allocation11 + $0x78] sm:$0xff] %v2060_v9 }
 0x609   :  { %2090 = dma.vmem_to_hbm [thread:$0]  %s2083_s8, 2048, %s2085_s24, [#allocation4], %s2760_s21, %s2760_s21, %s2761_s22  }
 0x60a   :  { %2751 = dma.done.wait [#allocation4], 2048  }
 0x60b   :  { %2752 = vsyncadd [#allocation4], 4294965248 }
 0x60c   :  { %2095 = vsyncpa [#allocation3], 1 }
 0x60d   :  { %2096 = vsyncpa [#allocation6], 1 }
 0x60e   :  { %2097 = vsyncpa [#allocation9], 1 }
 0x60f   :  { %2098 = vsyncpa [#allocation4], 1 }

</bundles_post_ra>
